<compile_context>
chip_gen: v7x
topology: tpu7x:2x2x1
jax: 0.10.0
libtpu: 0.0.40
codegen_flags: <defaults>
</compile_context>

<pallas_src>
import math
from functools import partial

import jax
import jax.numpy as jnp
from jax.experimental import pallas as pl
from jax.experimental.pallas import tpu as pltpu

# --- model config (small, consistent with the module's __init__) -------------
NUM_LAYERS = 2
D_MODEL = 32
NUM_HEADS = 4
D_K = D_MODEL // NUM_HEADS
DIM_FF = 64          # dim_feedforward (constructor arg; small for the demo)
LN_EPS = 1e-5        # torch.nn.LayerNorm default


# ------------------------------ in-kernel helpers -----------------------------
def _layer_norm(x, g, b):
    """x: (N, D) f32; g, b: (1, D) f32."""
    mean = jnp.mean(x, axis=-1, keepdims=True)
    var = jnp.mean(jnp.square(x - mean), axis=-1, keepdims=True)
    return (x - mean) * jax.lax.rsqrt(var + LN_EPS) * g + b


# ------------------------------ fused encoder kernel --------------------------
def _encoder_kernel(src_ref, cross_ref, w_attn_ref, w_ffn1_ref, w_ffn2_ref,
                    vecs_ref, fln_ref, o_ref, *, num_heads):
    _, S, D = src_ref.shape
    _, T, _ = cross_ref.shape
    L = w_attn_ref.shape[0]
    F = w_ffn1_ref.shape[2]
    H = num_heads
    d_k = D // H
    scale = 1.0 / math.sqrt(d_k)

    x = src_ref[0].astype(jnp.float32)          # (S, D)  running activations
    c = cross_ref[0].astype(jnp.float32)        # (T, D)  K/V source (constant)

    for l in range(L):                          # static unroll (L == 2)
        wa = w_attn_ref[l]                      # (D, 4D) = [WqT | WkT | WvT | WoT]
        w1 = w_ffn1_ref[l]                      # (D, F)   W1^T
        w2 = w_ffn2_ref[l]                      # (F, D)   W2^T
        vec = vecs_ref[l]                       # (8, 128) packed LN params / biases

        ln1_g, ln1_b = vec[0:1, 0:D], vec[0:1, D:2 * D]
        ln2_g, ln2_b = vec[0:1, 2 * D:3 * D], vec[0:1, 3 * D:4 * D]
        b_qkv = vec[1:2, 0:3 * D]               # [bq | bk | bv]  (1, 3D)
        b_o = vec[1:2, 3 * D:4 * D]             # (1, D)
        b_1 = vec[2:3, 0:F]                     # (1, F)
        b_2 = vec[2:3, F:F + D]                 # (1, D)

        # ---------------- pre-LN cross-attention block ----------------
        xn = _layer_norm(x, ln1_g, ln1_b)                               # (S, D)

        # Fused Q/K/V projection: one MXU push on [query-rows ; key/value-rows]
        # against the packed (D, 3D) weight.  Q comes from the normed src rows,
        # K/V from the cross rows.
        xc = jnp.concatenate([xn, c], axis=0)                           # (S+T, D)
        qkv = jnp.dot(xc, wa[:, 0:3 * D],
                      preferred_element_type=jnp.float32) + b_qkv       # (S+T, 3D)
        q = qkv[0:S, 0:D]                                               # (S, D)
        k = qkv[S:S + T, D:2 * D]                                       # (T, D)
        v = qkv[S:S + T, 2 * D:3 * D]                                   # (T, D)

        # Head-batched attention: leading head axis -> batched MXU einsums,
        # single softmax over (H, S, T).
        qh = jnp.stack([q[:, h * d_k:(h + 1) * d_k] for h in range(H)], axis=0)
        kh = jnp.stack([k[:, h * d_k:(h + 1) * d_k] for h in range(H)], axis=0)
        vh = jnp.stack([v[:, h * d_k:(h + 1) * d_k] for h in range(H)], axis=0)

        s = jnp.einsum('hqd,hkd->hqk', qh, kh,
                       preferred_element_type=jnp.float32) * scale      # (H, S, T)
        s = s - jnp.max(s, axis=-1, keepdims=True)                      # stable
        p = jnp.exp(s)
        p = p * pl.reciprocal(jnp.sum(p, axis=-1, keepdims=True), approx=True)
        ctx_h = jnp.einsum('hqk,hkd->hqd', p, vh,
                           preferred_element_type=jnp.float32)          # (H, S, d_k)
        ctx = jnp.concatenate([ctx_h[h] for h in range(H)], axis=-1)    # (S, D)

        attn_out = jnp.dot(ctx, wa[:, 3 * D:4 * D],
                           preferred_element_type=jnp.float32) + b_o    # (S, D)
        x = x + attn_out          # residual (attn dropout == identity, eval)

        # ---------------- pre-LN feed-forward block ----------------
        xn = _layer_norm(x, ln2_g, ln2_b)                               # (S, D)
        h1 = jnp.dot(xn, w1, preferred_element_type=jnp.float32) + b_1  # (S, F)
        h1 = jnp.maximum(h1, 0.0)                                       # ReLU
        ff = jnp.dot(h1, w2, preferred_element_type=jnp.float32) + b_2  # (S, D)
        x = x + ff                # residual (ff dropout == identity, eval)

    # final LayerNorm
    fg, fb = fln_ref[0:1, 0:D], fln_ref[0:1, D:2 * D]
    o_ref[0] = _layer_norm(x, fg, fb).astype(o_ref.dtype)


# ------------------------------ host-side packing ------------------------------
def _pack_params(layer_params, final_ln):
    D, F = D_MODEL, DIM_FF
    # Pre-transpose to [in, out] so the kernel never transposes weights.
    w_attn = jnp.stack(
        [jnp.concatenate([p["wq"].T, p["wk"].T, p["wv"].T, p["wo"].T], axis=1)
         for p in layer_params], axis=0)                                # (L, D, 4D)
    w_ffn1 = jnp.stack([p["w1"].T for p in layer_params], axis=0)       # (L, D, F)
    w_ffn2 = jnp.stack([p["w2"].T for p in layer_params], axis=0)       # (L, F, D)

    vec_list = []
    for p in layer_params:
        rows = jnp.zeros((8, 128), jnp.float32)
        rows = rows.at[0, :].set(jnp.concatenate(
            [p["ln1_g"], p["ln1_b"], p["ln2_g"], p["ln2_b"]]))          # 4*32 = 128
        rows = rows.at[1, :].set(jnp.concatenate(
            [p["bq"], p["bk"], p["bv"], p["bo"]]))                      # 4*32 = 128
        rows = rows.at[2, 0:F + D].set(jnp.concatenate([p["b1"], p["b2"]]))
        vec_list.append(rows)
    vecs = jnp.stack(vec_list, axis=0)                                  # (L, 8, 128)

    fln = jnp.zeros((8, 128), jnp.float32)
    fln = fln.at[0, 0:D].set(final_ln["g"]).at[0, D:2 * D].set(final_ln["b"])
    return w_attn, w_ffn1, w_ffn2, vecs, fln


# ------------------------------- fused forward ---------------------------------
def transformer_encoder(src, cross, layer_params, final_ln):
    B, S, D = src.shape
    T = cross.shape[1]
    L = len(layer_params)
    F = DIM_FF
    w_attn, w_ffn1, w_ffn2, vecs, fln = _pack_params(layer_params, final_ln)

    kernel = partial(_encoder_kernel, num_heads=NUM_HEADS)
    return pl.pallas_call(
        kernel,
        out_shape=jax.ShapeDtypeStruct((B, S, D), src.dtype),
        grid=(B,),
        in_specs=[
            pl.BlockSpec((1, S, D), lambda i: (i, 0, 0)),       # src (per batch)
            pl.BlockSpec((1, T, D), lambda i: (i, 0, 0)),       # cross (per batch)
            pl.BlockSpec((L, D, 4 * D), lambda i: (0, 0, 0)),   # packed attn weights
            pl.BlockSpec((L, D, F), lambda i: (0, 0, 0)),       # W1^T
            pl.BlockSpec((L, F, D), lambda i: (0, 0, 0)),       # W2^T
            pl.BlockSpec((L, 8, 128), lambda i: (0, 0, 0)),     # packed LN/bias vecs
            pl.BlockSpec((8, 128), lambda i: (0, 0)),           # final LN [g|b|pad]
        ],
        out_specs=pl.BlockSpec((1, S, D), lambda i: (i, 0, 0)),
        compiler_params=pltpu.CompilerParams(
            dimension_semantics=("parallel",)),                 # batch across TCs on v7x
    )(src, cross, w_attn, w_ffn1, w_ffn2, vecs, fln)


# ------------------------------ parameter init --------------------------------
def _init_linear(key, out_f, in_f):
    kw, kb = jax.random.split(key)
    bound = 1.0 / math.sqrt(in_f)                      # PyTorch nn.Linear default
    w = jax.random.uniform(kw, (out_f, in_f), jnp.float32, -bound, bound)
    b = jax.random.uniform(kb, (out_f,), jnp.float32, -bound, bound)
    return w, b


def init_params(key):
    layers = []
    for _ in range(NUM_LAYERS):
        keys = jax.random.split(key, 7)
        key = keys[0]
        wq, bq = _init_linear(keys[1], D_MODEL, D_MODEL)
        wk, bk = _init_linear(keys[2], D_MODEL, D_MODEL)
        wv, bv = _init_linear(keys[3], D_MODEL, D_MODEL)
        wo, bo = _init_linear(keys[4], D_MODEL, D_MODEL)
        w1, b1 = _init_linear(keys[5], DIM_FF, D_MODEL)
        w2, b2 = _init_linear(keys[6], D_MODEL, DIM_FF)
        layers.append(dict(
            ln1_g=jnp.ones((D_MODEL,), jnp.float32),
            ln1_b=jnp.zeros((D_MODEL,), jnp.float32),
            ln2_g=jnp.ones((D_MODEL,), jnp.float32),
            ln2_b=jnp.zeros((D_MODEL,), jnp.float32),
            wq=wq, bq=bq, wk=wk, bk=bk, wv=wv, bv=bv, wo=wo, bo=bo,
            w1=w1, b1=b1, w2=w2, b2=b2,
        ))
    final = dict(g=jnp.ones((D_MODEL,), jnp.float32),
                 b=jnp.zeros((D_MODEL,), jnp.float32))
    return layers, final


# ------------------------------ pure-JAX reference ------------------------------
def _reference_forward(src, cross, layer_params, final_ln):
    def ln(x, g, b):
        m = jnp.mean(x, -1, keepdims=True)
        v = jnp.mean(jnp.square(x - m), -1, keepdims=True)
        return (x - m) / jnp.sqrt(v + LN_EPS) * g + b

    x = src
    B, S, D = src.shape
    T = cross.shape[1]
    for p in layer_params:
        xn = ln(x, p["ln1_g"], p["ln1_b"])
        q = xn @ p["wq"].T + p["bq"]
        k = cross @ p["wk"].T + p["bk"]
        v = cross @ p["wv"].T + p["bv"]
        qh = q.reshape(B, S, NUM_HEADS, D_K).transpose(0, 2, 1, 3)
        kh = k.reshape(B, T, NUM_HEADS, D_K).transpose(0, 2, 1, 3)
        vh = v.reshape(B, T, NUM_HEADS, D_K).transpose(0, 2, 1, 3)
        s = qh @ jnp.swapaxes(kh, -1, -2) / math.sqrt(D_K)
        a = jax.nn.softmax(s, axis=-1)
        ctx = (a @ vh).transpose(0, 2, 1, 3).reshape(B, S, D)
        x = x + (ctx @ p["wo"].T + p["bo"])
        xn = ln(x, p["ln2_g"], p["ln2_b"])
        h = jax.nn.relu(xn @ p["w1"].T + p["b1"])
        x = x + (h @ p["w2"].T + p["b2"])
    return ln(x, final_ln["g"], final_ln["b"])


if __name__ == "__main__":
    key = jax.random.PRNGKey(0)
    k_src, k_cross, k_params = jax.random.split(key, 3)
    B, S, T = 2, 8, 8
    src = jax.random.normal(k_src, (B, S, D_MODEL), jnp.float32)
    cross = jax.random.normal(k_cross, (B, T, D_MODEL), jnp.float32)
    layer_params, final_ln = init_params(k_params)

    out = transformer_encoder(src, cross, layer_params, final_ln)
    out = jax.block_until_ready(out)
    assert out.shape == (B, S, D_MODEL), out.shape
    assert bool(jnp.all(jnp.isfinite(out)))

    ref = _reference_forward(src, cross, layer_params, final_ln)
    err = float(jnp.max(jnp.abs(out - ref)))
    assert err < 2e-2, f"max abs error vs reference: {err}"
    print("KERNEL_OK")
</pallas_src>

<mosaic_0001>
module attributes {stable_mosaic.version = 11 : i64} {
  func.func @_encoder_kernel(%arg0: i32, %arg1: memref<1x8x32xf32, #tpu.memory_space<vmem>>, %arg2: memref<1x8x32xf32, #tpu.memory_space<vmem>>, %arg3: memref<2x32x128xf32, #tpu.memory_space<vmem>>, %arg4: memref<2x32x64xf32, #tpu.memory_space<vmem>>, %arg5: memref<2x64x32xf32, #tpu.memory_space<vmem>>, %arg6: memref<2x8x128xf32, #tpu.memory_space<vmem>>, %arg7: memref<8x128xf32, #tpu.memory_space<vmem>>, %arg8: memref<1x8x32xf32, #tpu.memory_space<vmem>>) attributes {dimension_semantics = [#tpu.dimension_semantics<parallel>], iteration_bounds = array<i64: 2>, scalar_prefetch = 0 : i64, scratch_operands = 0 : i64, tpu.core_type = #tpu.core_type<tc>, window_params = [{transform_indices = @transform_0, window_bounds = array<i64: 1, 8, 32>}, {transform_indices = @transform_1, window_bounds = array<i64: 1, 8, 32>}, {pipeline_mode = #tpu.pipeline_mode<synchronous>, transform_indices = @transform_2, window_bounds = array<i64: 2, 32, 128>}, {pipeline_mode = #tpu.pipeline_mode<synchronous>, transform_indices = @transform_3, window_bounds = array<i64: 2, 32, 64>}, {pipeline_mode = #tpu.pipeline_mode<synchronous>, transform_indices = @transform_4, window_bounds = array<i64: 2, 64, 32>}, {pipeline_mode = #tpu.pipeline_mode<synchronous>, transform_indices = @transform_5, window_bounds = array<i64: 2, 8, 128>}, {pipeline_mode = #tpu.pipeline_mode<synchronous>, transform_indices = @transform_6, window_bounds = array<i64: 8, 128>}, {transform_indices = @transform_7, window_bounds = array<i64: 1, 8, 32>}]} {
    %c0 = arith.constant 0 : index
    %c0_0 = arith.constant 0 : index
    %c0_1 = arith.constant 0 : index
    %0 = vector.load %arg1[%c0, %c0_0, %c0_1] : memref<1x8x32xf32, #tpu.memory_space<vmem>>, vector<1x8x32xf32>
    %1 = vector.shape_cast %0 : vector<1x8x32xf32> to vector<8x32xf32>
    %c0_2 = arith.constant 0 : index
    %c0_3 = arith.constant 0 : index
    %c0_4 = arith.constant 0 : index
    %2 = vector.load %arg2[%c0_2, %c0_3, %c0_4] : memref<1x8x32xf32, #tpu.memory_space<vmem>>, vector<1x8x32xf32>
    %3 = vector.shape_cast %2 : vector<1x8x32xf32> to vector<8x32xf32>
    %c0_5 = arith.constant 0 : index
    %c0_6 = arith.constant 0 : index
    %c0_7 = arith.constant 0 : index
    %4 = vector.load %arg3[%c0_5, %c0_6, %c0_7] : memref<2x32x128xf32, #tpu.memory_space<vmem>>, vector<1x32x128xf32>
    %5 = vector.shape_cast %4 : vector<1x32x128xf32> to vector<32x128xf32>
    %c0_8 = arith.constant 0 : index
    %c0_9 = arith.constant 0 : index
    %c0_10 = arith.constant 0 : index
    %6 = vector.load %arg4[%c0_8, %c0_9, %c0_10] : memref<2x32x64xf32, #tpu.memory_space<vmem>>, vector<1x32x64xf32>
    %7 = vector.shape_cast %6 : vector<1x32x64xf32> to vector<32x64xf32>
    %c0_11 = arith.constant 0 : index
    %c0_12 = arith.constant 0 : index
    %c0_13 = arith.constant 0 : index
    %8 = vector.load %arg5[%c0_11, %c0_12, %c0_13] : memref<2x64x32xf32, #tpu.memory_space<vmem>>, vector<1x64x32xf32>
    %9 = vector.shape_cast %8 : vector<1x64x32xf32> to vector<64x32xf32>
    %c0_14 = arith.constant 0 : index
    %c0_15 = arith.constant 0 : index
    %c0_16 = arith.constant 0 : index
    %10 = vector.load %arg6[%c0_14, %c0_15, %c0_16] : memref<2x8x128xf32, #tpu.memory_space<vmem>>, vector<1x8x128xf32>
    %11 = vector.shape_cast %10 : vector<1x8x128xf32> to vector<8x128xf32>
    %12 = vector.extract_strided_slice %11 {offsets = [0, 0], sizes = [1, 32], strides = [1, 1]} : vector<8x128xf32> to vector<1x32xf32>
    %13 = vector.extract_strided_slice %11 {offsets = [0, 32], sizes = [1, 32], strides = [1, 1]} : vector<8x128xf32> to vector<1x32xf32>
    %14 = vector.extract_strided_slice %11 {offsets = [0, 64], sizes = [1, 32], strides = [1, 1]} : vector<8x128xf32> to vector<1x32xf32>
    %15 = vector.extract_strided_slice %11 {offsets = [0, 96], sizes = [1, 32], strides = [1, 1]} : vector<8x128xf32> to vector<1x32xf32>
    %16 = vector.extract_strided_slice %11 {offsets = [1, 0], sizes = [1, 96], strides = [1, 1]} : vector<8x128xf32> to vector<1x96xf32>
    %17 = vector.extract_strided_slice %11 {offsets = [1, 96], sizes = [1, 32], strides = [1, 1]} : vector<8x128xf32> to vector<1x32xf32>
    %18 = vector.extract_strided_slice %11 {offsets = [2, 0], sizes = [1, 64], strides = [1, 1]} : vector<8x128xf32> to vector<1x64xf32>
    %19 = vector.extract_strided_slice %11 {offsets = [2, 64], sizes = [1, 32], strides = [1, 1]} : vector<8x128xf32> to vector<1x32xf32>
    %cst = arith.constant dense<0.000000e+00> : vector<8xf32>
    %20 = vector.multi_reduction <add>, %1, %cst [1] : vector<8x32xf32> to vector<8xf32>
    %21 = vector.shape_cast %20 : vector<8xf32> to vector<8x1xf32>
    %cst_17 = arith.constant 3.200000e+01 : f32
    %22 = vector.broadcast %cst_17 : f32 to vector<8x1xf32>
    %23 = arith.divf %21, %22 : vector<8x1xf32>
    %24 = vector.broadcast %23 : vector<8x1xf32> to vector<8x32xf32>
    %25 = arith.subf %1, %24 : vector<8x32xf32>
    %26 = arith.mulf %25, %25 : vector<8x32xf32>
    %cst_18 = arith.constant dense<0.000000e+00> : vector<8xf32>
    %27 = vector.multi_reduction <add>, %26, %cst_18 [1] : vector<8x32xf32> to vector<8xf32>
    %28 = vector.shape_cast %27 : vector<8xf32> to vector<8x1xf32>
    %cst_19 = arith.constant 3.200000e+01 : f32
    %29 = vector.broadcast %cst_19 : f32 to vector<8x1xf32>
    %30 = arith.divf %28, %29 : vector<8x1xf32>
    %31 = vector.broadcast %23 : vector<8x1xf32> to vector<8x32xf32>
    %32 = arith.subf %1, %31 : vector<8x32xf32>
    %cst_20 = arith.constant 9.99999974E-6 : f32
    %33 = vector.broadcast %cst_20 : f32 to vector<8x1xf32>
    %34 = arith.addf %30, %33 : vector<8x1xf32>
    %35 = math.rsqrt %34 : vector<8x1xf32>
    %36 = vector.broadcast %35 : vector<8x1xf32> to vector<8x32xf32>
    %37 = arith.mulf %32, %36 : vector<8x32xf32>
    %38 = vector.broadcast %12 : vector<1x32xf32> to vector<8x32xf32>
    %39 = arith.mulf %37, %38 : vector<8x32xf32>
    %40 = vector.broadcast %13 : vector<1x32xf32> to vector<8x32xf32>
    %41 = arith.addf %39, %40 : vector<8x32xf32>
    %42 = tpu.concatenate %41, %3 in 0 : vector<8x32xf32>, vector<8x32xf32> -> vector<16x32xf32>
    %43 = vector.extract_strided_slice %5 {offsets = [0, 0], sizes = [32, 96], strides = [1, 1]} : vector<32x128xf32> to vector<32x96xf32>
    %cst_21 = arith.constant dense<0.000000e+00> : vector<16x96xf32>
    %44 = tpu.matmul %42, %43, %cst_21 {dimension_numbers = #tpu.dot_dimension_numbers<[1], [0], [0], [1], [0, 0, 1, 1], [], []>} : vector<16x32xf32>, vector<32x96xf32>, vector<16x96xf32> -> vector<16x96xf32>
    %45 = vector.broadcast %16 : vector<1x96xf32> to vector<16x96xf32>
    %46 = arith.addf %44, %45 : vector<16x96xf32>
    %47 = vector.extract_strided_slice %46 {offsets = [0, 0], sizes = [8, 32], strides = [1, 1]} : vector<16x96xf32> to vector<8x32xf32>
    %48 = vector.extract_strided_slice %46 {offsets = [8, 32], sizes = [8, 32], strides = [1, 1]} : vector<16x96xf32> to vector<8x32xf32>
    %49 = vector.extract_strided_slice %46 {offsets = [8, 64], sizes = [8, 32], strides = [1, 1]} : vector<16x96xf32> to vector<8x32xf32>
    %50 = vector.extract_strided_slice %47 {offsets = [0, 0], sizes = [8, 8], strides = [1, 1]} : vector<8x32xf32> to vector<8x8xf32>
    %51 = vector.extract_strided_slice %47 {offsets = [0, 8], sizes = [8, 8], strides = [1, 1]} : vector<8x32xf32> to vector<8x8xf32>
    %52 = vector.extract_strided_slice %47 {offsets = [0, 16], sizes = [8, 8], strides = [1, 1]} : vector<8x32xf32> to vector<8x8xf32>
    %53 = vector.extract_strided_slice %47 {offsets = [0, 24], sizes = [8, 8], strides = [1, 1]} : vector<8x32xf32> to vector<8x8xf32>
    %54 = vector.shape_cast %50 : vector<8x8xf32> to vector<1x8x8xf32>
    %55 = vector.shape_cast %51 : vector<8x8xf32> to vector<1x8x8xf32>
    %56 = vector.shape_cast %52 : vector<8x8xf32> to vector<1x8x8xf32>
    %57 = vector.shape_cast %53 : vector<8x8xf32> to vector<1x8x8xf32>
    %58 = tpu.concatenate %54, %55, %56, %57 in 0 : vector<1x8x8xf32>, vector<1x8x8xf32>, vector<1x8x8xf32>, vector<1x8x8xf32> -> vector<4x8x8xf32>
    %59 = vector.extract_strided_slice %48 {offsets = [0, 0], sizes = [8, 8], strides = [1, 1]} : vector<8x32xf32> to vector<8x8xf32>
    %60 = vector.extract_strided_slice %48 {offsets = [0, 8], sizes = [8, 8], strides = [1, 1]} : vector<8x32xf32> to vector<8x8xf32>
    %61 = vector.extract_strided_slice %48 {offsets = [0, 16], sizes = [8, 8], strides = [1, 1]} : vector<8x32xf32> to vector<8x8xf32>
    %62 = vector.extract_strided_slice %48 {offsets = [0, 24], sizes = [8, 8], strides = [1, 1]} : vector<8x32xf32> to vector<8x8xf32>
    %63 = vector.shape_cast %59 : vector<8x8xf32> to vector<1x8x8xf32>
    %64 = vector.shape_cast %60 : vector<8x8xf32> to vector<1x8x8xf32>
    %65 = vector.shape_cast %61 : vector<8x8xf32> to vector<1x8x8xf32>
    %66 = vector.shape_cast %62 : vector<8x8xf32> to vector<1x8x8xf32>
    %67 = tpu.concatenate %63, %64, %65, %66 in 0 : vector<1x8x8xf32>, vector<1x8x8xf32>, vector<1x8x8xf32>, vector<1x8x8xf32> -> vector<4x8x8xf32>
    %68 = vector.extract_strided_slice %49 {offsets = [0, 0], sizes = [8, 8], strides = [1, 1]} : vector<8x32xf32> to vector<8x8xf32>
    %69 = vector.extract_strided_slice %49 {offsets = [0, 8], sizes = [8, 8], strides = [1, 1]} : vector<8x32xf32> to vector<8x8xf32>
    %70 = vector.extract_strided_slice %49 {offsets = [0, 16], sizes = [8, 8], strides = [1, 1]} : vector<8x32xf32> to vector<8x8xf32>
    %71 = vector.extract_strided_slice %49 {offsets = [0, 24], sizes = [8, 8], strides = [1, 1]} : vector<8x32xf32> to vector<8x8xf32>
    %72 = vector.shape_cast %68 : vector<8x8xf32> to vector<1x8x8xf32>
    %73 = vector.shape_cast %69 : vector<8x8xf32> to vector<1x8x8xf32>
    %74 = vector.shape_cast %70 : vector<8x8xf32> to vector<1x8x8xf32>
    %75 = vector.shape_cast %71 : vector<8x8xf32> to vector<1x8x8xf32>
    %76 = tpu.concatenate %72, %73, %74, %75 in 0 : vector<1x8x8xf32>, vector<1x8x8xf32>, vector<1x8x8xf32>, vector<1x8x8xf32> -> vector<4x8x8xf32>
    "tpu.trace_start"() <{level = 10 : i32, message = "hqd,hkd->hqk"}> : () -> ()
    %cst_22 = arith.constant dense<0.000000e+00> : vector<4x8x8xf32>
    %77 = tpu.matmul %58, %67, %cst_22 {dimension_numbers = #tpu.dot_dimension_numbers<[2], [2], [1], [1], [0, 0, 0, 1, 1, 1], [0], [0]>} : vector<4x8x8xf32>, vector<4x8x8xf32>, vector<4x8x8xf32> -> vector<4x8x8xf32>
    "tpu.trace_stop"() : () -> ()
    %cst_23 = arith.constant 0.353553385 : f32
    %78 = vector.broadcast %cst_23 : f32 to vector<4x8x8xf32>
    %79 = arith.mulf %77, %78 : vector<4x8x8xf32>
    %cst_24 = arith.constant dense<0xFF800000> : vector<4x8xf32>
    %80 = vector.multi_reduction <maximumf>, %79, %cst_24 [2] : vector<4x8x8xf32> to vector<4x8xf32>
    %81 = vector.shape_cast %80 : vector<4x8xf32> to vector<4x8x1xf32>
    %82 = vector.broadcast %81 : vector<4x8x1xf32> to vector<4x8x8xf32>
    %83 = arith.subf %79, %82 : vector<4x8x8xf32>
    %84 = math.exp %83 : vector<4x8x8xf32>
    %cst_25 = arith.constant dense<0.000000e+00> : vector<4x8xf32>
    %85 = vector.multi_reduction <add>, %84, %cst_25 [2] : vector<4x8x8xf32> to vector<4x8xf32>
    %86 = vector.shape_cast %85 : vector<4x8xf32> to vector<4x8x1xf32>
    %87 = tpu.reciprocal %86 {approx = true} : vector<4x8x1xf32> -> vector<4x8x1xf32>
    %88 = vector.broadcast %87 : vector<4x8x1xf32> to vector<4x8x8xf32>
    %89 = arith.mulf %84, %88 : vector<4x8x8xf32>
    "tpu.trace_start"() <{level = 10 : i32, message = "hqk,hkd->hqd"}> : () -> ()
    %cst_26 = arith.constant dense<0.000000e+00> : vector<4x8x8xf32>
    %90 = tpu.matmul %89, %76, %cst_26 {dimension_numbers = #tpu.dot_dimension_numbers<[2], [1], [1], [2], [0, 0, 0, 1, 1, 2], [0], [0]>} : vector<4x8x8xf32>, vector<4x8x8xf32>, vector<4x8x8xf32> -> vector<4x8x8xf32>
    "tpu.trace_stop"() : () -> ()
    %91 = vector.extract_strided_slice %90 {offsets = [0, 0, 0], sizes = [1, 8, 8], strides = [1, 1, 1]} : vector<4x8x8xf32> to vector<1x8x8xf32>
    %92 = vector.shape_cast %91 : vector<1x8x8xf32> to vector<8x8xf32>
    %93 = vector.extract_strided_slice %90 {offsets = [1, 0, 0], sizes = [1, 8, 8], strides = [1, 1, 1]} : vector<4x8x8xf32> to vector<1x8x8xf32>
    %94 = vector.shape_cast %93 : vector<1x8x8xf32> to vector<8x8xf32>
    %95 = vector.extract_strided_slice %90 {offsets = [2, 0, 0], sizes = [1, 8, 8], strides = [1, 1, 1]} : vector<4x8x8xf32> to vector<1x8x8xf32>
    %96 = vector.shape_cast %95 : vector<1x8x8xf32> to vector<8x8xf32>
    %97 = vector.extract_strided_slice %90 {offsets = [3, 0, 0], sizes = [1, 8, 8], strides = [1, 1, 1]} : vector<4x8x8xf32> to vector<1x8x8xf32>
    %98 = vector.shape_cast %97 : vector<1x8x8xf32> to vector<8x8xf32>
    %99 = tpu.concatenate %92, %94, %96, %98 in 1 : vector<8x8xf32>, vector<8x8xf32>, vector<8x8xf32>, vector<8x8xf32> -> vector<8x32xf32>
    %100 = vector.extract_strided_slice %5 {offsets = [0, 96], sizes = [32, 32], strides = [1, 1]} : vector<32x128xf32> to vector<32x32xf32>
    %cst_27 = arith.constant dense<0.000000e+00> : vector<8x32xf32>
    %101 = tpu.matmul %99, %100, %cst_27 {dimension_numbers = #tpu.dot_dimension_numbers<[1], [0], [0], [1], [0, 0, 1, 1], [], []>} : vector<8x32xf32>, vector<32x32xf32>, vector<8x32xf32> -> vector<8x32xf32>
    %102 = vector.broadcast %17 : vector<1x32xf32> to vector<8x32xf32>
    %103 = arith.addf %101, %102 : vector<8x32xf32>
    %104 = arith.addf %1, %103 : vector<8x32xf32>
    %cst_28 = arith.constant dense<0.000000e+00> : vector<8xf32>
    %105 = vector.multi_reduction <add>, %104, %cst_28 [1] : vector<8x32xf32> to vector<8xf32>
    %106 = vector.shape_cast %105 : vector<8xf32> to vector<8x1xf32>
    %cst_29 = arith.constant 3.200000e+01 : f32
    %107 = vector.broadcast %cst_29 : f32 to vector<8x1xf32>
    %108 = arith.divf %106, %107 : vector<8x1xf32>
    %109 = vector.broadcast %108 : vector<8x1xf32> to vector<8x32xf32>
    %110 = arith.subf %104, %109 : vector<8x32xf32>
    %111 = arith.mulf %110, %110 : vector<8x32xf32>
    %cst_30 = arith.constant dense<0.000000e+00> : vector<8xf32>
    %112 = vector.multi_reduction <add>, %111, %cst_30 [1] : vector<8x32xf32> to vector<8xf32>
    %113 = vector.shape_cast %112 : vector<8xf32> to vector<8x1xf32>
    %cst_31 = arith.constant 3.200000e+01 : f32
    %114 = vector.broadcast %cst_31 : f32 to vector<8x1xf32>
    %115 = arith.divf %113, %114 : vector<8x1xf32>
    %116 = vector.broadcast %108 : vector<8x1xf32> to vector<8x32xf32>
    %117 = arith.subf %104, %116 : vector<8x32xf32>
    %cst_32 = arith.constant 9.99999974E-6 : f32
    %118 = vector.broadcast %cst_32 : f32 to vector<8x1xf32>
    %119 = arith.addf %115, %118 : vector<8x1xf32>
    %120 = math.rsqrt %119 : vector<8x1xf32>
    %121 = vector.broadcast %120 : vector<8x1xf32> to vector<8x32xf32>
    %122 = arith.mulf %117, %121 : vector<8x32xf32>
    %123 = vector.broadcast %14 : vector<1x32xf32> to vector<8x32xf32>
    %124 = arith.mulf %122, %123 : vector<8x32xf32>
    %125 = vector.broadcast %15 : vector<1x32xf32> to vector<8x32xf32>
    %126 = arith.addf %124, %125 : vector<8x32xf32>
    %cst_33 = arith.constant dense<0.000000e+00> : vector<8x64xf32>
    %127 = tpu.matmul %126, %7, %cst_33 {dimension_numbers = #tpu.dot_dimension_numbers<[1], [0], [0], [1], [0, 0, 1, 1], [], []>} : vector<8x32xf32>, vector<32x64xf32>, vector<8x64xf32> -> vector<8x64xf32>
    %128 = vector.broadcast %18 : vector<1x64xf32> to vector<8x64xf32>
    %129 = arith.addf %127, %128 : vector<8x64xf32>
    %cst_34 = arith.constant 0.000000e+00 : f32
    %130 = vector.broadcast %cst_34 : f32 to vector<8x64xf32>
    %131 = arith.maximumf %129, %130 : vector<8x64xf32>
    %cst_35 = arith.constant dense<0.000000e+00> : vector<8x32xf32>
    %132 = tpu.matmul %131, %9, %cst_35 {dimension_numbers = #tpu.dot_dimension_numbers<[1], [0], [0], [1], [0, 0, 1, 1], [], []>} : vector<8x64xf32>, vector<64x32xf32>, vector<8x32xf32> -> vector<8x32xf32>
    %133 = vector.broadcast %19 : vector<1x32xf32> to vector<8x32xf32>
    %134 = arith.addf %132, %133 : vector<8x32xf32>
    %135 = arith.addf %104, %134 : vector<8x32xf32>
    %c1 = arith.constant 1 : index
    %c0_36 = arith.constant 0 : index
    %c0_37 = arith.constant 0 : index
    %136 = vector.load %arg3[%c1, %c0_36, %c0_37] : memref<2x32x128xf32, #tpu.memory_space<vmem>>, vector<1x32x128xf32>
    %137 = vector.shape_cast %136 : vector<1x32x128xf32> to vector<32x128xf32>
    %c1_38 = arith.constant 1 : index
    %c0_39 = arith.constant 0 : index
    %c0_40 = arith.constant 0 : index
    %138 = vector.load %arg4[%c1_38, %c0_39, %c0_40] : memref<2x32x64xf32, #tpu.memory_space<vmem>>, vector<1x32x64xf32>
    %139 = vector.shape_cast %138 : vector<1x32x64xf32> to vector<32x64xf32>
    %c1_41 = arith.constant 1 : index
    %c0_42 = arith.constant 0 : index
    %c0_43 = arith.constant 0 : index
    %140 = vector.load %arg5[%c1_41, %c0_42, %c0_43] : memref<2x64x32xf32, #tpu.memory_space<vmem>>, vector<1x64x32xf32>
    %141 = vector.shape_cast %140 : vector<1x64x32xf32> to vector<64x32xf32>
    %c1_44 = arith.constant 1 : index
    %c0_45 = arith.constant 0 : index
    %c0_46 = arith.constant 0 : index
    %142 = vector.load %arg6[%c1_44, %c0_45, %c0_46] : memref<2x8x128xf32, #tpu.memory_space<vmem>>, vector<1x8x128xf32>
    %143 = vector.shape_cast %142 : vector<1x8x128xf32> to vector<8x128xf32>
    %144 = vector.extract_strided_slice %143 {offsets = [0, 0], sizes = [1, 32], strides = [1, 1]} : vector<8x128xf32> to vector<1x32xf32>
    %145 = vector.extract_strided_slice %143 {offsets = [0, 32], sizes = [1, 32], strides = [1, 1]} : vector<8x128xf32> to vector<1x32xf32>
    %146 = vector.extract_strided_slice %143 {offsets = [0, 64], sizes = [1, 32], strides = [1, 1]} : vector<8x128xf32> to vector<1x32xf32>
    %147 = vector.extract_strided_slice %143 {offsets = [0, 96], sizes = [1, 32], strides = [1, 1]} : vector<8x128xf32> to vector<1x32xf32>
    %148 = vector.extract_strided_slice %143 {offsets = [1, 0], sizes = [1, 96], strides = [1, 1]} : vector<8x128xf32> to vector<1x96xf32>
    %149 = vector.extract_strided_slice %143 {offsets = [1, 96], sizes = [1, 32], strides = [1, 1]} : vector<8x128xf32> to vector<1x32xf32>
    %150 = vector.extract_strided_slice %143 {offsets = [2, 0], sizes = [1, 64], strides = [1, 1]} : vector<8x128xf32> to vector<1x64xf32>
    %151 = vector.extract_strided_slice %143 {offsets = [2, 64], sizes = [1, 32], strides = [1, 1]} : vector<8x128xf32> to vector<1x32xf32>
    %cst_47 = arith.constant dense<0.000000e+00> : vector<8xf32>
    %152 = vector.multi_reduction <add>, %135, %cst_47 [1] : vector<8x32xf32> to vector<8xf32>
    %153 = vector.shape_cast %152 : vector<8xf32> to vector<8x1xf32>
    %cst_48 = arith.constant 3.200000e+01 : f32
    %154 = vector.broadcast %cst_48 : f32 to vector<8x1xf32>
    %155 = arith.divf %153, %154 : vector<8x1xf32>
    %156 = vector.broadcast %155 : vector<8x1xf32> to vector<8x32xf32>
    %157 = arith.subf %135, %156 : vector<8x32xf32>
    %158 = arith.mulf %157, %157 : vector<8x32xf32>
    %cst_49 = arith.constant dense<0.000000e+00> : vector<8xf32>
    %159 = vector.multi_reduction <add>, %158, %cst_49 [1] : vector<8x32xf32> to vector<8xf32>
    %160 = vector.shape_cast %159 : vector<8xf32> to vector<8x1xf32>
    %cst_50 = arith.constant 3.200000e+01 : f32
    %161 = vector.broadcast %cst_50 : f32 to vector<8x1xf32>
    %162 = arith.divf %160, %161 : vector<8x1xf32>
    %163 = vector.broadcast %155 : vector<8x1xf32> to vector<8x32xf32>
    %164 = arith.subf %135, %163 : vector<8x32xf32>
    %cst_51 = arith.constant 9.99999974E-6 : f32
    %165 = vector.broadcast %cst_51 : f32 to vector<8x1xf32>
    %166 = arith.addf %162, %165 : vector<8x1xf32>
    %167 = math.rsqrt %166 : vector<8x1xf32>
    %168 = vector.broadcast %167 : vector<8x1xf32> to vector<8x32xf32>
    %169 = arith.mulf %164, %168 : vector<8x32xf32>
    %170 = vector.broadcast %144 : vector<1x32xf32> to vector<8x32xf32>
    %171 = arith.mulf %169, %170 : vector<8x32xf32>
    %172 = vector.broadcast %145 : vector<1x32xf32> to vector<8x32xf32>
    %173 = arith.addf %171, %172 : vector<8x32xf32>
    %174 = tpu.concatenate %173, %3 in 0 : vector<8x32xf32>, vector<8x32xf32> -> vector<16x32xf32>
    %175 = vector.extract_strided_slice %137 {offsets = [0, 0], sizes = [32, 96], strides = [1, 1]} : vector<32x128xf32> to vector<32x96xf32>
    %cst_52 = arith.constant dense<0.000000e+00> : vector<16x96xf32>
    %176 = tpu.matmul %174, %175, %cst_52 {dimension_numbers = #tpu.dot_dimension_numbers<[1], [0], [0], [1], [0, 0, 1, 1], [], []>} : vector<16x32xf32>, vector<32x96xf32>, vector<16x96xf32> -> vector<16x96xf32>
    %177 = vector.broadcast %148 : vector<1x96xf32> to vector<16x96xf32>
    %178 = arith.addf %176, %177 : vector<16x96xf32>
    %179 = vector.extract_strided_slice %178 {offsets = [0, 0], sizes = [8, 32], strides = [1, 1]} : vector<16x96xf32> to vector<8x32xf32>
    %180 = vector.extract_strided_slice %178 {offsets = [8, 32], sizes = [8, 32], strides = [1, 1]} : vector<16x96xf32> to vector<8x32xf32>
    %181 = vector.extract_strided_slice %178 {offsets = [8, 64], sizes = [8, 32], strides = [1, 1]} : vector<16x96xf32> to vector<8x32xf32>
    %182 = vector.extract_strided_slice %179 {offsets = [0, 0], sizes = [8, 8], strides = [1, 1]} : vector<8x32xf32> to vector<8x8xf32>
    %183 = vector.extract_strided_slice %179 {offsets = [0, 8], sizes = [8, 8], strides = [1, 1]} : vector<8x32xf32> to vector<8x8xf32>
    %184 = vector.extract_strided_slice %179 {offsets = [0, 16], sizes = [8, 8], strides = [1, 1]} : vector<8x32xf32> to vector<8x8xf32>
    %185 = vector.extract_strided_slice %179 {offsets = [0, 24], sizes = [8, 8], strides = [1, 1]} : vector<8x32xf32> to vector<8x8xf32>
    %186 = vector.shape_cast %182 : vector<8x8xf32> to vector<1x8x8xf32>
    %187 = vector.shape_cast %183 : vector<8x8xf32> to vector<1x8x8xf32>
    %188 = vector.shape_cast %184 : vector<8x8xf32> to vector<1x8x8xf32>
    %189 = vector.shape_cast %185 : vector<8x8xf32> to vector<1x8x8xf32>
    %190 = tpu.concatenate %186, %187, %188, %189 in 0 : vector<1x8x8xf32>, vector<1x8x8xf32>, vector<1x8x8xf32>, vector<1x8x8xf32> -> vector<4x8x8xf32>
    %191 = vector.extract_strided_slice %180 {offsets = [0, 0], sizes = [8, 8], strides = [1, 1]} : vector<8x32xf32> to vector<8x8xf32>
    %192 = vector.extract_strided_slice %180 {offsets = [0, 8], sizes = [8, 8], strides = [1, 1]} : vector<8x32xf32> to vector<8x8xf32>
    %193 = vector.extract_strided_slice %180 {offsets = [0, 16], sizes = [8, 8], strides = [1, 1]} : vector<8x32xf32> to vector<8x8xf32>
    %194 = vector.extract_strided_slice %180 {offsets = [0, 24], sizes = [8, 8], strides = [1, 1]} : vector<8x32xf32> to vector<8x8xf32>
    %195 = vector.shape_cast %191 : vector<8x8xf32> to vector<1x8x8xf32>
    %196 = vector.shape_cast %192 : vector<8x8xf32> to vector<1x8x8xf32>
    %197 = vector.shape_cast %193 : vector<8x8xf32> to vector<1x8x8xf32>
    %198 = vector.shape_cast %194 : vector<8x8xf32> to vector<1x8x8xf32>
    %199 = tpu.concatenate %195, %196, %197, %198 in 0 : vector<1x8x8xf32>, vector<1x8x8xf32>, vector<1x8x8xf32>, vector<1x8x8xf32> -> vector<4x8x8xf32>
    %200 = vector.extract_strided_slice %181 {offsets = [0, 0], sizes = [8, 8], strides = [1, 1]} : vector<8x32xf32> to vector<8x8xf32>
    %201 = vector.extract_strided_slice %181 {offsets = [0, 8], sizes = [8, 8], strides = [1, 1]} : vector<8x32xf32> to vector<8x8xf32>
    %202 = vector.extract_strided_slice %181 {offsets = [0, 16], sizes = [8, 8], strides = [1, 1]} : vector<8x32xf32> to vector<8x8xf32>
    %203 = vector.extract_strided_slice %181 {offsets = [0, 24], sizes = [8, 8], strides = [1, 1]} : vector<8x32xf32> to vector<8x8xf32>
    %204 = vector.shape_cast %200 : vector<8x8xf32> to vector<1x8x8xf32>
    %205 = vector.shape_cast %201 : vector<8x8xf32> to vector<1x8x8xf32>
    %206 = vector.shape_cast %202 : vector<8x8xf32> to vector<1x8x8xf32>
    %207 = vector.shape_cast %203 : vector<8x8xf32> to vector<1x8x8xf32>
    %208 = tpu.concatenate %204, %205, %206, %207 in 0 : vector<1x8x8xf32>, vector<1x8x8xf32>, vector<1x8x8xf32>, vector<1x8x8xf32> -> vector<4x8x8xf32>
    "tpu.trace_start"() <{level = 10 : i32, message = "hqd,hkd->hqk"}> : () -> ()
    %cst_53 = arith.constant dense<0.000000e+00> : vector<4x8x8xf32>
    %209 = tpu.matmul %190, %199, %cst_53 {dimension_numbers = #tpu.dot_dimension_numbers<[2], [2], [1], [1], [0, 0, 0, 1, 1, 1], [0], [0]>} : vector<4x8x8xf32>, vector<4x8x8xf32>, vector<4x8x8xf32> -> vector<4x8x8xf32>
    "tpu.trace_stop"() : () -> ()
    %cst_54 = arith.constant 0.353553385 : f32
    %210 = vector.broadcast %cst_54 : f32 to vector<4x8x8xf32>
    %211 = arith.mulf %209, %210 : vector<4x8x8xf32>
    %cst_55 = arith.constant dense<0xFF800000> : vector<4x8xf32>
    %212 = vector.multi_reduction <maximumf>, %211, %cst_55 [2] : vector<4x8x8xf32> to vector<4x8xf32>
    %213 = vector.shape_cast %212 : vector<4x8xf32> to vector<4x8x1xf32>
    %214 = vector.broadcast %213 : vector<4x8x1xf32> to vector<4x8x8xf32>
    %215 = arith.subf %211, %214 : vector<4x8x8xf32>
    %216 = math.exp %215 : vector<4x8x8xf32>
    %cst_56 = arith.constant dense<0.000000e+00> : vector<4x8xf32>
    %217 = vector.multi_reduction <add>, %216, %cst_56 [2] : vector<4x8x8xf32> to vector<4x8xf32>
    %218 = vector.shape_cast %217 : vector<4x8xf32> to vector<4x8x1xf32>
    %219 = tpu.reciprocal %218 {approx = true} : vector<4x8x1xf32> -> vector<4x8x1xf32>
    %220 = vector.broadcast %219 : vector<4x8x1xf32> to vector<4x8x8xf32>
    %221 = arith.mulf %216, %220 : vector<4x8x8xf32>
    "tpu.trace_start"() <{level = 10 : i32, message = "hqk,hkd->hqd"}> : () -> ()
    %cst_57 = arith.constant dense<0.000000e+00> : vector<4x8x8xf32>
    %222 = tpu.matmul %221, %208, %cst_57 {dimension_numbers = #tpu.dot_dimension_numbers<[2], [1], [1], [2], [0, 0, 0, 1, 1, 2], [0], [0]>} : vector<4x8x8xf32>, vector<4x8x8xf32>, vector<4x8x8xf32> -> vector<4x8x8xf32>
    "tpu.trace_stop"() : () -> ()
    %223 = vector.extract_strided_slice %222 {offsets = [0, 0, 0], sizes = [1, 8, 8], strides = [1, 1, 1]} : vector<4x8x8xf32> to vector<1x8x8xf32>
    %224 = vector.shape_cast %223 : vector<1x8x8xf32> to vector<8x8xf32>
    %225 = vector.extract_strided_slice %222 {offsets = [1, 0, 0], sizes = [1, 8, 8], strides = [1, 1, 1]} : vector<4x8x8xf32> to vector<1x8x8xf32>
    %226 = vector.shape_cast %225 : vector<1x8x8xf32> to vector<8x8xf32>
    %227 = vector.extract_strided_slice %222 {offsets = [2, 0, 0], sizes = [1, 8, 8], strides = [1, 1, 1]} : vector<4x8x8xf32> to vector<1x8x8xf32>
    %228 = vector.shape_cast %227 : vector<1x8x8xf32> to vector<8x8xf32>
    %229 = vector.extract_strided_slice %222 {offsets = [3, 0, 0], sizes = [1, 8, 8], strides = [1, 1, 1]} : vector<4x8x8xf32> to vector<1x8x8xf32>
    %230 = vector.shape_cast %229 : vector<1x8x8xf32> to vector<8x8xf32>
    %231 = tpu.concatenate %224, %226, %228, %230 in 1 : vector<8x8xf32>, vector<8x8xf32>, vector<8x8xf32>, vector<8x8xf32> -> vector<8x32xf32>
    %232 = vector.extract_strided_slice %137 {offsets = [0, 96], sizes = [32, 32], strides = [1, 1]} : vector<32x128xf32> to vector<32x32xf32>
    %cst_58 = arith.constant dense<0.000000e+00> : vector<8x32xf32>
    %233 = tpu.matmul %231, %232, %cst_58 {dimension_numbers = #tpu.dot_dimension_numbers<[1], [0], [0], [1], [0, 0, 1, 1], [], []>} : vector<8x32xf32>, vector<32x32xf32>, vector<8x32xf32> -> vector<8x32xf32>
    %234 = vector.broadcast %149 : vector<1x32xf32> to vector<8x32xf32>
    %235 = arith.addf %233, %234 : vector<8x32xf32>
    %236 = arith.addf %135, %235 : vector<8x32xf32>
    %cst_59 = arith.constant dense<0.000000e+00> : vector<8xf32>
    %237 = vector.multi_reduction <add>, %236, %cst_59 [1] : vector<8x32xf32> to vector<8xf32>
    %238 = vector.shape_cast %237 : vector<8xf32> to vector<8x1xf32>
    %cst_60 = arith.constant 3.200000e+01 : f32
    %239 = vector.broadcast %cst_60 : f32 to vector<8x1xf32>
    %240 = arith.divf %238, %239 : vector<8x1xf32>
    %241 = vector.broadcast %240 : vector<8x1xf32> to vector<8x32xf32>
    %242 = arith.subf %236, %241 : vector<8x32xf32>
    %243 = arith.mulf %242, %242 : vector<8x32xf32>
    %cst_61 = arith.constant dense<0.000000e+00> : vector<8xf32>
    %244 = vector.multi_reduction <add>, %243, %cst_61 [1] : vector<8x32xf32> to vector<8xf32>
    %245 = vector.shape_cast %244 : vector<8xf32> to vector<8x1xf32>
    %cst_62 = arith.constant 3.200000e+01 : f32
    %246 = vector.broadcast %cst_62 : f32 to vector<8x1xf32>
    %247 = arith.divf %245, %246 : vector<8x1xf32>
    %248 = vector.broadcast %240 : vector<8x1xf32> to vector<8x32xf32>
    %249 = arith.subf %236, %248 : vector<8x32xf32>
    %cst_63 = arith.constant 9.99999974E-6 : f32
    %250 = vector.broadcast %cst_63 : f32 to vector<8x1xf32>
    %251 = arith.addf %247, %250 : vector<8x1xf32>
    %252 = math.rsqrt %251 : vector<8x1xf32>
    %253 = vector.broadcast %252 : vector<8x1xf32> to vector<8x32xf32>
    %254 = arith.mulf %249, %253 : vector<8x32xf32>
    %255 = vector.broadcast %146 : vector<1x32xf32> to vector<8x32xf32>
    %256 = arith.mulf %254, %255 : vector<8x32xf32>
    %257 = vector.broadcast %147 : vector<1x32xf32> to vector<8x32xf32>
    %258 = arith.addf %256, %257 : vector<8x32xf32>
    %cst_64 = arith.constant dense<0.000000e+00> : vector<8x64xf32>
    %259 = tpu.matmul %258, %139, %cst_64 {dimension_numbers = #tpu.dot_dimension_numbers<[1], [0], [0], [1], [0, 0, 1, 1], [], []>} : vector<8x32xf32>, vector<32x64xf32>, vector<8x64xf32> -> vector<8x64xf32>
    %260 = vector.broadcast %150 : vector<1x64xf32> to vector<8x64xf32>
    %261 = arith.addf %259, %260 : vector<8x64xf32>
    %cst_65 = arith.constant 0.000000e+00 : f32
    %262 = vector.broadcast %cst_65 : f32 to vector<8x64xf32>
    %263 = arith.maximumf %261, %262 : vector<8x64xf32>
    %cst_66 = arith.constant dense<0.000000e+00> : vector<8x32xf32>
    %264 = tpu.matmul %263, %141, %cst_66 {dimension_numbers = #tpu.dot_dimension_numbers<[1], [0], [0], [1], [0, 0, 1, 1], [], []>} : vector<8x64xf32>, vector<64x32xf32>, vector<8x32xf32> -> vector<8x32xf32>
    %265 = vector.broadcast %151 : vector<1x32xf32> to vector<8x32xf32>
    %266 = arith.addf %264, %265 : vector<8x32xf32>
    %267 = arith.addf %236, %266 : vector<8x32xf32>
    %c0_67 = arith.constant 0 : index
    %c0_68 = arith.constant 0 : index
    %268 = vector.load %arg7[%c0_67, %c0_68] : memref<8x128xf32, #tpu.memory_space<vmem>>, vector<1x32xf32>
    %c0_69 = arith.constant 0 : index
    %c32 = arith.constant 32 : index
    %269 = vector.load %arg7[%c0_69, %c32] : memref<8x128xf32, #tpu.memory_space<vmem>>, vector<1x32xf32>
    %cst_70 = arith.constant dense<0.000000e+00> : vector<8xf32>
    %270 = vector.multi_reduction <add>, %267, %cst_70 [1] : vector<8x32xf32> to vector<8xf32>
    %271 = vector.shape_cast %270 : vector<8xf32> to vector<8x1xf32>
    %cst_71 = arith.constant 3.200000e+01 : f32
    %272 = vector.broadcast %cst_71 : f32 to vector<8x1xf32>
    %273 = arith.divf %271, %272 : vector<8x1xf32>
    %274 = vector.broadcast %273 : vector<8x1xf32> to vector<8x32xf32>
    %275 = arith.subf %267, %274 : vector<8x32xf32>
    %276 = arith.mulf %275, %275 : vector<8x32xf32>
    %cst_72 = arith.constant dense<0.000000e+00> : vector<8xf32>
    %277 = vector.multi_reduction <add>, %276, %cst_72 [1] : vector<8x32xf32> to vector<8xf32>
    %278 = vector.shape_cast %277 : vector<8xf32> to vector<8x1xf32>
    %cst_73 = arith.constant 3.200000e+01 : f32
    %279 = vector.broadcast %cst_73 : f32 to vector<8x1xf32>
    %280 = arith.divf %278, %279 : vector<8x1xf32>
    %281 = vector.broadcast %273 : vector<8x1xf32> to vector<8x32xf32>
    %282 = arith.subf %267, %281 : vector<8x32xf32>
    %cst_74 = arith.constant 9.99999974E-6 : f32
    %283 = vector.broadcast %cst_74 : f32 to vector<8x1xf32>
    %284 = arith.addf %280, %283 : vector<8x1xf32>
    %285 = math.rsqrt %284 : vector<8x1xf32>
    %286 = vector.broadcast %285 : vector<8x1xf32> to vector<8x32xf32>
    %287 = arith.mulf %282, %286 : vector<8x32xf32>
    %288 = vector.broadcast %268 : vector<1x32xf32> to vector<8x32xf32>
    %289 = arith.mulf %287, %288 : vector<8x32xf32>
    %290 = vector.broadcast %269 : vector<1x32xf32> to vector<8x32xf32>
    %291 = arith.addf %289, %290 : vector<8x32xf32>
    %c0_75 = arith.constant 0 : index
    %c0_76 = arith.constant 0 : index
    %c0_77 = arith.constant 0 : index
    %292 = vector.load %arg8[%c0_75, %c0_76, %c0_77] : memref<1x8x32xf32, #tpu.memory_space<vmem>>, vector<1x8x32xf32>
    %293 = vector.shape_cast %292 : vector<1x8x32xf32> to vector<8x32xf32>
    %294 = vector.shape_cast %291 : vector<8x32xf32> to vector<1x8x32xf32>
    tpu.vector_store %arg8[%c0_75, %c0_76, %c0_77], %294 {strides = array<i32>} : memref<1x8x32xf32, #tpu.memory_space<vmem>>, vector<1x8x32xf32>,
    return
  }
  func.func @transform_0(%arg0: i32) -> (i32, i32, i32) {
    %c0_i32 = arith.constant 0 : i32
    %c0_i32_0 = arith.constant 0 : i32
    %c0_i32_1 = arith.constant 0 : i32
    return %arg0, %c0_i32, %c0_i32_0 : i32, i32, i32
  }
  func.func @transform_1(%arg0: i32) -> (i32, i32, i32) {
    %c0_i32 = arith.constant 0 : i32
    %c0_i32_0 = arith.constant 0 : i32
    %c0_i32_1 = arith.constant 0 : i32
    return %arg0, %c0_i32, %c0_i32_0 : i32, i32, i32
  }
  func.func @transform_2(%arg0: i32) -> (i32, i32, i32) {
    %c0_i32 = arith.constant 0 : i32
    %c0_i32_0 = arith.constant 0 : i32
    %c0_i32_1 = arith.constant 0 : i32
    %c0_i32_2 = arith.constant 0 : i32
    return %c0_i32, %c0_i32_0, %c0_i32_1 : i32, i32, i32
  }
  func.func @transform_3(%arg0: i32) -> (i32, i32, i32) {
    %c0_i32 = arith.constant 0 : i32
    %c0_i32_0 = arith.constant 0 : i32
    %c0_i32_1 = arith.constant 0 : i32
    %c0_i32_2 = arith.constant 0 : i32
    return %c0_i32, %c0_i32_0, %c0_i32_1 : i32, i32, i32
  }
  func.func @transform_4(%arg0: i32) -> (i32, i32, i32) {
    %c0_i32 = arith.constant 0 : i32
    %c0_i32_0 = arith.constant 0 : i32
    %c0_i32_1 = arith.constant 0 : i32
    %c0_i32_2 = arith.constant 0 : i32
    return %c0_i32, %c0_i32_0, %c0_i32_1 : i32, i32, i32
  }
  func.func @transform_5(%arg0: i32) -> (i32, i32, i32) {
    %c0_i32 = arith.constant 0 : i32
    %c0_i32_0 = arith.constant 0 : i32
    %c0_i32_1 = arith.constant 0 : i32
    %c0_i32_2 = arith.constant 0 : i32
    return %c0_i32, %c0_i32_0, %c0_i32_1 : i32, i32, i32
  }
  func.func @transform_6(%arg0: i32) -> (i32, i32) {
    %c0_i32 = arith.constant 0 : i32
    %c0_i32_0 = arith.constant 0 : i32
    %c0_i32_1 = arith.constant 0 : i32
    return %c0_i32, %c0_i32_0 : i32, i32
  }
  func.func @transform_7(%arg0: i32) -> (i32, i32, i32) {
    %c0_i32 = arith.constant 0 : i32
    %c0_i32_0 = arith.constant 0 : i32
    %c0_i32_1 = arith.constant 0 : i32
    return %arg0, %c0_i32, %c0_i32_0 : i32, i32, i32
  }
}

</mosaic_0001>

<bundles_post_ra>
// kernel: tpu_custom_call.1
= control target key start
LH: loop header
LB: loop body
LE: loop exit
PB: predicated region body
PF: predicated region fallthrough
CT: control target
= control target key end

     0   :  { %12 = vsyncpa [#allocation3], 0  ;;  %s3736_s0 = inlined_call_operand.vmem [shape: f32[2,8,32], index: 0, kind: input, shape index: {}]   ;;  %s3737_s1 = inlined_call_operand.vmem [shape: f32[2,8,32], index: 1, kind: input, shape index: {}]   ;;  %s3738_s2 = inlined_call_operand.vmem [shape: f32[2,32,128], index: 2, kind: input, shape index: {}]   ;;  %s3739_s3 = inlined_call_operand.vmem [shape: f32[2,32,64], index: 3, kind: input, shape index: {}]   ;;  %s3740_s4 = inlined_call_operand.vmem [shape: f32[2,64,32], index: 4, kind: input, shape index: {}]   ;;  %s3741_s5 = inlined_call_operand.vmem [shape: f32[2,8,128], index: 5, kind: input, shape index: {}]   ;;  %s3742_s6 = inlined_call_operand.vmem [shape: f32[8,128], index: 6, kind: input, shape index: {}]   ;;  %s3743_s7 = inlined_call_operand.hbm [shape: f32[2,8,32], index: 7, kind: output, shape index: {}]  }
   0x1   :  { %14 = vsyncpa [#allocation3 + $0x1], 0  ;;  %s3195_s24 = smov 0   ;;  %s3197_s25 = smov 0  }
   0x2   :  { %s3199_s26 = smov 0   ;;  %s3201_s27 = smov 0  }
   0x3 LB: > { %s3216_s28 = sadd.s32 4294967295, %s3140_s27   ;;  %s2572_s29 = sadd.s32 4294967294, %s3140_s27   ;;  %s3140_s27 = sphi %s3201_s27, %s3761_s27   ;;  %s3136_s26 = sphi %s3199_s26, %s3760_s26   ;;  %s3132_s25 = sphi %s3197_s25, %s3759_s25   ;;  %s3128_s24 = sphi %s3195_s24, %s3758_s24  }
   0x4   : > { %s3220_s30 = sadd.s32 1, %s3140_s27   ;;  %s184_s8 = sadd.s32 1, %s3136_s26 }
   0x5   : > { %s181_s9 = ssub.s32 %s3140_s27, %s3220_s30  ;;  %p194_p0 = scmp.ne.s32.totalorder %s3136_s26, %s3132_s25 }
   0x6   : > { %p182_p1 = scmp.eq.s32.totalorder %s181_s9, 0  ;;  %p195_p2 = scmp.eq.s32.totalorder %s3216_s28, 1 }
   0x7   : > { %p200_p3 = scmp.ne.s32.totalorder %s3132_s25, %s3128_s24  ;;  %p201_p4 = scmp.eq.s32.totalorder %s2572_s29, 1 }
   0x8   : > { %s3231_s10 = scalar_select %p182_p1, %s3136_s26, %s184_s8  }
   0x9   : > { %p3233_p5 = por %p195_p2, %p194_p0  ;;  %p3237_p6 = por %p201_p4, %p200_p3 }
   0xa   : > { %p2575_p7 = scmp.ge.s32.totalorder %s3140_s27, 1  ;;  %p248_p8 = scmp.lt.s32.totalorder %s3140_s27, 3 }
   0xc   : > { %p249_p9 = pnand %p2575_p7, %p248_p8 }
   0xd   : > { %p283_p10 = scmp.lt.s32.totalorder (!%p249_p9), %s3216_s28, 1  ;;  %vm310_vm0 = vcmask (!%p249_p9), 261120   ;;  %v325_v2 = vlaneseq (!%p249_p9)  ;;  %v3262_v4 = vld [vmem:[%s3741_s5] sm:$0xff] (!%p249_p9)  ;;  %s3142_s20 = smov (!%p249_p9), 96   ;;  %v3282_v13 = vld [vmem:[%s3738_s2 + $0x8] sm:$0xff] (!%p249_p9)  ;;  %v3291_v16 = vld [vmem:[%s3738_s2 + $0x10] sm:$0xff] (!%p249_p9) }
   0xe   : > { %252 = sbr.rel (%p249_p9) target bundleno = 5527 (0x1597), region = 48  ;;  %v3277_v12 = vld [vmem:[%s3738_s2] sm:$0xff] (!%p249_p9)  ;;  %v3296_v17 = vld [vmem:[%s3738_s2 + $0x18] sm:$0xff] (!%p249_p9)  ;;  %v3143_v29 = vmov (!%p249_p9), 0.0   ;;  %vm3144_vm1 = vmmov (!%p249_p9), 0   ;;  %s3147_s21 = smov (!%p249_p9), 104  }
   0xf   : > { %v3257_v3 = vshrl.u32 (!%p249_p9), %v325_v2, 7  ;;  %v3016_v14 = vpack.i.bf16 (!%p249_p9), %v3282_v13, %v3277_v12  ;;  %v2901_v15 = vpack.c.bf16 (!%p249_p9), %v3282_v13, %v3277_v12  ;;  %v2905_v18 = vpack.c.bf16 (!%p249_p9), %v3296_v17, %v3291_v16  ;;  %2738 = vmatprep.subr.mxu0 (!%p249_p9), %v3143_v29  ;;  %2740 = vmatprep.mubr.msk.f32.mxu0 (!%p249_p9), %vm3144_vm1, %v3143_v29  ;;  %s3148_s22 = smov (!%p249_p9), 64   ;;  %s3747_s23 = smov (!%p249_p9), 32  }
  0x10   : > { %vm436_vm2 = vcmask (!%p249_p9), 64512   ;;  %s3746_s29 = smov (!%p249_p9), 8   ;;  %s3745_s8 = smov (!%p249_p9), 16   ;;  %vm1104_vm3 = vcmask (!%p249_p9), 130048   ;;  %vm1106_vm4 = vcmask (!%p249_p9), 195584   ;;  %vm1305_vm5 = vcmask (!%p249_p9), 523264  }
  0x11   : > { %v327_v5 = vsub.s32 (!%p249_p9), 0, %v3257_v3  ;;  %2902 = vmatprep.subr.bf16.mxu1 (!%p249_p9), %v2901_v15  ;;  %v337_v28 = vsub.s32 (!%p249_p9), 1, %v3257_v3  ;;  %s3744_s9 = smov (!%p249_p9), 24   ;;  %s2632_s15 = sshll.u32 (!%p249_p9), %s3216_s28, 7 }
  0x12   : > { %2904 = vmatpush3.bf16.msra.mxu1 (!%p249_p9), %v2901_v15 }
  0x13   : > { %v3268_v6 = vrot.slane (!%p249_p9), %v3262_v4, %v327_v5  ;;  %2906 = vmatprep.subr.bf16.mxu1 (!%p249_p9), %v2905_v18  ;;  %v3317_v30 = vrot.slane (!%p249_p9), %v3262_v4, %v337_v28 }
  0x15   : > { %s3245_s13 = scalar_select %p283_p10, %s3216_s28, 1  ;;  %331 = vrot.lane.b32.xlu1 %v3268_v6, %s3142_s20 }
  0x16   : > { %2908 = vmatpush3.bf16.msra.mxu1 %v2905_v18  ;;  %s3154_s28 = smov [#allocation2]  }
  0x17   : > { %s2577_s14 = sshll.u32 %s3245_s13, 3  ;;  %2728 = vmatprep.subr.mxu1 %v3143_v29  ;;  %s3749_s13 = smov 112  }
  0x18   : > { %s286_s17 = scalar_lea.vmem %s3736_s0, %s2577_s14  ;;  %s290_s19 = scalar_lea.vmem %s3737_s1, %s2577_s14 }
  0x19   : > { %v3253_v0 = vld [vmem:[%s286_s17] sm:$0xff]  ;;  %s3146_s14 = smov 120  }
  0x1a   : > { %v311_v1 = vsel %vm310_vm0, %v3253_v0, 0.0  ;;  %v3306_v27 = vld [vmem:[%s290_s19] sm:$0xff] }
  0x1b   : > { %312 = vadd.xlane.f32.xlu0 %v311_v1 }
  0x87   : > { %v332_v24 = vpop.permute.xlu1 %331 }
  0xa8   : > { %v313_v7 = vpop.xlane.xlu0 %312 }
  0xa9   : > { %v315_v8 = vmul.f32 0.03125, %v313_v7 }
  0xab   : > { %v316_v9 = vsub.f32 %v3253_v0, %v315_v8 }
  0xad   : > { %v317_v10 = vmul.f32 %v316_v9, %v316_v9 }
  0xaf   : > { %v318_v11 = vsel %vm310_vm0, %v317_v10, 0.0 }
  0xb0   : > { %319 = vadd.xlane.f32.xlu0 %v318_v11 }
 0x13d   : > { %v320_v19 = vpop.xlane.xlu0 %319 }
 0x13e   : > { %v321_v20 = vmul.f32 0.03125, %v320_v19 }
 0x140   : > { %v322_v21 = vadd.f32 1e-05, %v321_v20 }
 0x142   : > { %3036 = vrsqrt.f32 %v322_v21 }
 0x14c   : > { %v3037_v22 = vpop.eup %3036 }
 0x14d   : > { %v324_v23 = vmul.f32 %v3037_v22, %v316_v9 }
 0x14f   : > { %v329_v25 = vmul.f32 %v3268_v6, %v324_v23 }
 0x151   : > { %v334_v26 = vadd.f32 %v332_v24, %v329_v25 }
 0x153   : > { %2725 = vmatprep.mubr.msk.f32.mxu1 %vm310_vm0, %v334_v26 }
 0x154   : > { %2726 = vmatmul.mubr.msk.f32.vlgmr.msra.gmra.mrb[0].mxu1 %vm310_vm0, %v3306_v27 }
 0x155   : > { %2730 = vmatprep.mubr.msk.f32.mxu1 %vm3144_vm1, %v3143_v29 }
 0x227   : > { %v2727_v31 = vpop.f32.mrb[0].mxu1 }
 0x228   : > { %v3324_v32 = vadd.f32 %v2727_v31, %v3317_v30  ;;  %v411_v33 = vpop.f32.mrb[1].mxu1 }
 0x229   : > { %v412_v34 = vadd.f32 %v411_v33, %v3317_v30 }
 0x22a   : > { %430 = vrot.lane.b32.xlu0 %v3324_v32, %s3749_s13  ;;  %428 = vrot.lane.b32.xlu1 %v3324_v32, %s3146_s14 }
 0x22e   : > { %432 = vrot.lane.b32.xlu1 %v3324_v32, %s3147_s21  ;;  %423 = vrot.lane.b32.xlu0 %v412_v34, %s3749_s13  ;;  %s280_s13 = sand.u32 1, %s3132_s25  }
 0x232   : > { %434 = vrot.lane.b32.xlu1 %v3324_v32, %s3142_s20 }
 0x236   : > { %421 = vrot.lane.b32.xlu1 %v412_v34, %s3146_s14 }
 0x29c   : > { %v3337_v35 = vpop.permute.xlu1 %428  ;;  %v3341_v36 = vpop.permute.xlu0 %430 }
 0x29d   : > { %511 = vrot.lane.b32.xlu1 %v3337_v35, %s3142_s20 }
 0x2a0   : > { %v3343_v37 = vpop.permute.xlu1 %432  ;;  %v424_v42 = vpop.permute.xlu0 %423 }
 0x2a1   : > { %587 = vrot.lane.b32.xlu1 %v3341_v36, %s3142_s20 }
 0x2a4   : > { %v435_v38 = vpop.permute.xlu1 %434 }
 0x2a5   : > { %2729 = vmatpush3.xpose.msk.msra.mxu1 %vm436_vm2, %v435_v38  ;;  %663 = vrot.lane.b32.xlu1 %v3343_v37, %s3142_s20  ;;  %v3021_v38 = vpack.i.bf16 %v3296_v17, %v3291_v16 }
 0x2a6   : > { %2733 = vmatprep.subr.mxu1 %v3143_v29 }
 0x2a8   : > { %2731 = vmatmul.mubr.msk.f32.vlgmr.msra.gmra.mrb[2].mxu1 %vm436_vm2, %v412_v34  ;;  %v422_v39 = vpop.permute.xlu1 %421 }
 0x2a9   : > { %425 = vrot.lane.b32.xlu1 %v412_v34, %s3147_s21  ;;  %2735 = vmatprep.mubr.msk.f32.mxu1 %vm3144_vm1, %v3143_v29 }
 0x30f   : > { %v512_v40 = vpop.permute.xlu1 %511 }
 0x310   : > { %2734 = vmatpush3.xpose.msk.msra.mxu1 %vm436_vm2, %v512_v40 }
 0x311   : > { %2743 = vmatprep.subr.mxu1 %v3143_v29 }
 0x313   : > { %v588_v41 = vpop.permute.xlu1 %587  ;;  %2736 = vmatmul.mubr.msk.f32.vlgmr.msra.gmra.mrb[4].mxu1 %vm436_vm2, %v422_v39 }
 0x314   : > { %2739 = vmatpush3.xpose.msk.msra.mxu0 %vm436_vm2, %v588_v41  ;;  %2745 = vmatprep.mubr.msk.f32.mxu1 %vm3144_vm1, %v3143_v29 }
 0x315   : > { %2748 = vmatprep.subr.mxu0 %v3143_v29 }
 0x317   : > { %2741 = vmatmul.mubr.msk.f32.vlgmr.msra.gmra.mrb[0].mxu0 %vm436_vm2, %v424_v42  ;;  %v664_v43 = vpop.permute.xlu1 %663 }
 0x318   : > { %2744 = vmatpush3.xpose.msk.msra.mxu1 %vm436_vm2, %v664_v43  ;;  %2750 = vmatprep.mubr.msk.f32.mxu0 %vm3144_vm1, %v3143_v29 }
 0x319   : > { %2753 = vmatprep.subr.mxu1 %v3143_v29 }
 0x31b   : > { %v426_v44 = vpop.permute.xlu1 %425 }
 0x31c   : > { %2746 = vmatmul.mubr.msk.f32.vlgmr.msra.gmra.mrb[6].mxu1 %vm436_vm2, %v426_v44 }
 0x31d   : > { %2755 = vmatprep.mubr.msk.f32.mxu1 %vm3144_vm1, %v3143_v29 }
 0x37b   : > { %v507_v45 = vpop.f32.mrb[2].mxu1 }
 0x37c   : > { %v739_v46 = vmul.f32 0.35355338, %v507_v45  ;;  %v2732_v47 = vpop.f32.mrb[3].mxu1 }
 0x37e   : > { %v743_v48 = vsel %vm436_vm2, %v739_v46, -inf }
 0x37f   : > { %744 = vmax.xlane.f32.xlu0 %v743_v48 }
 0x3e6   : > { %v583_v49 = vpop.f32.mrb[4].mxu1 }
 0x3e7   : > { %v740_v50 = vmul.f32 0.35355338, %v583_v49  ;;  %v2737_v51 = vpop.f32.mrb[5].mxu1 }
 0x3e9   : > { %v746_v52 = vsel %vm436_vm2, %v740_v50, -inf }
 0x3ea   : > { %v659_v53 = vpop.f32.mrb[0].mxu0  ;;  %747 = vmax.xlane.f32.xlu1 %v746_v52  ;;  %v3150_v52 = vmov 0.0|0.0  }
 0x3eb   : > { %v741_v54 = vmul.f32 0.35355338, %v659_v53  ;;  %v2742_v55 = vpop.f32.mrb[1].mxu0 }
 0x3ed   : > { %v749_v56 = vsel %vm436_vm2, %v741_v54, -inf }
 0x3ee   : > { %750 = vmax.xlane.f32.xlu0 %v749_v56 }
 0x3ef   : > { %v735_v57 = vpop.f32.mrb[6].mxu1 }
 0x3f0   : > { %v742_v58 = vmul.f32 0.35355338, %v735_v57  ;;  %v2747_v59 = vpop.f32.mrb[7].mxu1 }
 0x3f2   : > { %v752_v60 = vsel %vm436_vm2, %v742_v58, -inf }
 0x3f3   : > { %753 = vmax.xlane.f32.xlu0 %v752_v60 }
 0x3fb   : > { %787 = vrot.lane.b32.xlu1 %v3324_v32, %s3148_s22 }
 0x40c   : > { %v745_v61 = vpop.xlane.xlu0 %744 }
 0x40d   : > { %v755_v62 = vsub.f32 %v739_v46, %v745_v61 }
 0x40f   : > { %v759_v63 = vmul.f32 1.442695, %v755_v62 }
 0x411   : > { %3038 = vpow2.f32 %v759_v63 }
 0x41b   : > { %v3039_v1 = vpop.eup %3038 }
 0x41c   : > { %v767_v2 = vsel %vm436_vm2, %v3039_v1, 0.0 }
 0x41f   : > { %768 = vadd.xlane.f32.xlu1 %v767_v2 }
 0x477   : > { %v748_v7 = vpop.xlane.xlu1 %747 }
 0x478   : > { %v756_v8 = vsub.f32 %v740_v50, %v748_v7 }
 0x47a   : > { %v761_v9 = vmul.f32 1.442695, %v756_v8 }
 0x47b   : > { %v751_v10 = vpop.xlane.xlu0 %750  ;;  %v788_v11 = vpop.permute.xlu1 %787 }
 0x47c   : > { %3040 = vpow2.f32 %v761_v9  ;;  %v757_v15 = vsub.f32 %v741_v54, %v751_v10  ;;  %2749 = vmatpush3.msra.mxu0 %v788_v11 }
 0x47d   : > { %2758 = vmatprep.subr.mxu0 %v3143_v29 }
 0x47e   : > { %v763_v18 = vmul.f32 1.442695, %v757_v15 }
 0x480   : > { %3042 = vpow2.f32 %v763_v18  ;;  %v754_v19 = vpop.xlane.xlu0 %753 }
 0x481   : > { %v758_v20 = vsub.f32 %v742_v58, %v754_v19 }
 0x483   : > { %v765_v21 = vmul.f32 1.442695, %v758_v20 }
 0x485   : > { %3044 = vpow2.f32 %v765_v21 }
 0x486   : > { %v3041_v22 = vpop.eup %3040 }
 0x487   : > { %v770_v23 = vsel %vm436_vm2, %v3041_v22, 0.0 }
 0x488   : > { %771 = vadd.xlane.f32.xlu0 %v770_v23 }
 0x48a   : > { %v3043_v24 = vpop.eup %3042 }
 0x48b   : > { %v773_v25 = vsel %vm436_vm2, %v3043_v24, 0.0 }
 0x48c   : > { %774 = vadd.xlane.f32.xlu1 %v773_v25 }
 0x48f   : > { %v3045_v26 = vpop.eup %3044 }
 0x490   : > { %v776_v31 = vsel %vm436_vm2, %v3045_v26, 0.0 }
 0x491   : > { %777 = vadd.xlane.f32.xlu0 %v776_v31  ;;  %v302_v31 = vld [vmem:[%s3740_s4 + $0x8] sm:$0xff] }
 0x49d   : > { %939 = vrot.lane.b32.xlu1 %v3341_v36, %s3148_s22 }
 0x4a1   : > { %1015 = vrot.lane.b32.xlu1 %v3343_v37, %s3148_s22 }
 0x4a5   : > { %3022 = vrot.lane.b32.xlu1 %v3021_v38, %s3747_s23  ;;  %v304_v38 = vld [vmem:[%s3740_s4 + $0x18] sm:$0xff] }
 0x4a7   : > { %863 = vrot.lane.b32.xlu0 %v3337_v35, %s3148_s22 }
 0x4ab   : > { %3017 = vrot.lane.b32.xlu0 %v3016_v14, %s3747_s23 }
 0x4ac   : > { %v769_v32 = vpop.xlane.xlu1 %768 }
 0x4ad   : > { %3046 = vrcp.f32 %v769_v32  ;;  %v303_v32 = vld [vmem:[%s3740_s4 + $0x10] sm:$0xff] }
 0x4b7   : > { %v3047_v33 = vpop.eup %3046 }
 0x4b8   : > { %v783_v34 = vmul.f32 %v3047_v33, %v3039_v1  ;;  %v1225_v33 = vsub.s32 2, %v3257_v3  ;;  %v2609_v3 = vld [vmem:[%s3740_s4 + $0x68] sm:$0xff] }
 0x4ba   : > { %2751 = vmatmul.mubr.msk.f32.vlgmr.msra.gmra.mrb[2].mxu0 %vm436_vm2, %v783_v34 }
 0x4bb   : > { %2760 = vmatprep.mubr.msk.f32.mxu0 %vm3144_vm1, %v3143_v29 }
 0x515   : > { %v772_v35 = vpop.xlane.xlu0 %771 }
 0x516   : > { %3048 = vrcp.f32 %v772_v35  ;;  %v1226_v35 = vrot.slane %v3262_v4, %v1225_v33 }
 0x519   : > { %v775_v36 = vpop.xlane.xlu1 %774 }
 0x51a   : > { %3050 = vrcp.f32 %v775_v36  ;;  %v2925_v36 = vpack.c.bf16 %v304_v38, %v303_v32 }
 0x51d   : > { %v940_v37 = vpop.permute.xlu1 %939 }
 0x51e   : > { %2759 = vmatpush3.msra.mxu0 %v940_v37  ;;  %v778_v39 = vpop.xlane.xlu0 %777  ;;  %v305_v37 = vld [vmem:[%s3740_s4 + $0x20] sm:$0xff] }
 0x51f   : > { %3052 = vrcp.f32 %v778_v39  ;;  %2909 = vmatprep.subr.bf16.mxu0 %v3150_v52  ;;  %v306_v39 = vld [vmem:[%s3740_s4 + $0x28] sm:$0xff] }
 0x520   : > { %v3049_v40 = vpop.eup %3048 }
 0x521   : > { %v784_v41 = vmul.f32 %v3049_v40, %v3041_v22  ;;  %v1016_v17 = vpop.permute.xlu1 %1015  ;;  %v298_v22 = vld [vmem:[%s3739_s3 + $0x8] sm:$0xff]  ;;  %v2928_v40 = vpack.c.bf16 %v306_v39, %v305_v37 }
 0x522   : > { %v864_v42 = vpop.permute.xlu0 %863 }
 0x523   : > { %2754 = vmatpush3.msra.mxu1 %v864_v42 }
 0x524   : > { %v3051_v16 = vpop.eup %3050  ;;  %2756 = vmatmul.mubr.msk.f32.vlgmr.msra.gmra.mrb[8].mxu1 %vm436_vm2, %v784_v41  ;;  %2763 = vmatprep.subr.mxu1 %v3143_v29 }
 0x525   : > { %v785_v12 = vmul.f32 %v3051_v16, %v3043_v24  ;;  %2764 = vmatpush3.msra.mxu1 %v1016_v17  ;;  %2765 = vmatprep.mubr.msk.f32.mxu1 %vm3144_vm1, %v3143_v29  ;;  %v3023_v48 = vpop.permute.xlu1 %3022  ;;  %v299_v24 = vld [vmem:[%s3739_s3 + $0x10] sm:$0xff] }
 0x526   : > { %v3018_v45 = vpop.permute.xlu0 %3017  ;;  %v3025_v50 = vunpack.i.h.bf16 %v3023_v48  ;;  %v3024_v51 = vunpack.i.l.bf16 %v3023_v48  ;;  %2915 = vmatprep.subr.bf16.mxu1 %v3150_v52 }
 0x527   : > { %2761 = vmatmul.mubr.msk.f32.vlgmr.msra.gmra.mrb[4].mxu0 %vm436_vm2, %v785_v12  ;;  %v3020_v46 = vunpack.i.h.bf16 %v3018_v45  ;;  %v3019_v47 = vunpack.i.l.bf16 %v3018_v45  ;;  %v308_v45 = vld [vmem:[%s3740_s4 + $0x38] sm:$0xff] }
 0x528   : > { %2776 = vmatprep.mubr.msk.f32.mxu0 %vm3144_vm1, %v3143_v29  ;;  %v2913_v53 = vpack.c.bf16 %v3025_v50, %v3024_v51 }
 0x529   : > { %v3053_v13 = vpop.eup %3052  ;;  %v2910_v49 = vpack.c.bf16 %v3020_v46, %v3019_v47 }
 0x52a   : > { %v786_v14 = vmul.f32 %v3053_v13, %v3045_v26  ;;  %v301_v26 = vld [vmem:[%s3740_s4] sm:$0xff] }
 0x52b   : > { %2911 = vmatpush3.bf16.msra.mxu0 %v2910_v49  ;;  %v2922_v34 = vpack.c.bf16 %v302_v31, %v301_v26 }
 0x52c   : > { %2766 = vmatmul.mubr.msk.f32.vlgmr.msra.gmra.mrb[10].mxu1 %vm436_vm2, %v786_v14  ;;  %2912 = vmatprep.subr.bf16.mxu0 %v3150_v52 }
 0x52d   : > { %2787 = vmatprep.mubr.msk.f32.mxu1 %vm3144_vm1, %v3143_v29 }
 0x52f   : > { %2914 = vmatpush3.bf16.msra.mxu0 %v2913_v53 }
 0x530   : > { %2921 = vmatprep.subr.bf16.mxu0 %v3150_v52 }
 0x58d   : > { %v859_v43 = vpop.f32.mrb[2].mxu0 }
 0x58e   : > { %v2752_v44 = vpop.f32.mrb[3].mxu0 }
 0x58f   : > { %v307_v44 = vld [vmem:[%s3740_s4 + $0x30] sm:$0xff] }
 0x590   : > { %v2931_v46 = vpack.c.bf16 %v308_v45, %v307_v44 }
 0x5f7   : > { %v935_v54 = vpop.f32.mrb[8].mxu1 }
 0x5f8   : > { %1092 = vrot.lane.b32.xlu0 %v935_v54, %s3746_s29  ;;  %v2757_v55 = vpop.f32.mrb[9].mxu1  ;;  %s3756_s29 = smov 16  }
 0x5fa   : > { %v1011_v56 = vpop.f32.mrb[4].mxu0 }
 0x5fb   : > { %1096 = vrot.lane.b32.xlu1 %v1011_v56, %s3745_s8  ;;  %v2762_v57 = vpop.f32.mrb[5].mxu0  ;;  %s3757_s8 = smov 24  }
 0x5ff   : > { %v1087_v58 = vpop.f32.mrb[10].mxu1  ;;  %1125 = vrot.lane.b32.xlu1 %v3317_v30, %s3747_s23 }
 0x600   : > { %1100 = vrot.lane.b32.xlu0 %v1087_v58, %s3744_s9  ;;  %v2767_v59 = vpop.f32.mrb[11].mxu1  ;;  %s3753_s9 = smov 112  }
 0x66a   : > { %v1093_v60 = vpop.permute.xlu0 %1092 }
 0x66b   : > { %v1103_v62 = vsel %vm436_vm2, %v859_v43, %v1093_v60 }
 0x66d   : > { %v1097_v61 = vpop.permute.xlu1 %1096 }
 0x66e   : > { %v1105_v63 = vsel %vm1104_vm3, %v1103_v62, %v1097_v61 }
 0x671   : > { %v1126_v30 = vpop.permute.xlu1 %1125 }
 0x672   : > { %v1101_v1 = vpop.permute.xlu0 %1100 }
 0x673   : > { %v1107_v2 = vsel %vm1106_vm4, %v1105_v63, %v1101_v1  ;;  %v3493_v63 = vld [vmem:[%s3741_s5 + $0x8] sm:$0xff] }
 0x674   : > { %2777 = vmatmul.mubr.msk.f32.vlgmr.msra.gmra.mrb[6].mxu0 %vm310_vm0, %v1107_v2  ;;  %v3498_v1 = vrot.slane %v3493_v63, %v327_v5  ;;  %v3503_v2 = vld [vmem:[%s3738_s2 + $0x20] sm:$0xff]  ;;  %v3520_v5 = vld [vmem:[%s3738_s2 + $0x38] sm:$0xff] }
 0x675   : > { %2806 = vmatprep.mubr.msk.f32.mxu0 %vm3144_vm1, %v3143_v29  ;;  %2923 = vmatpush3.bf16.msra.mxu0 %v2922_v34 }
 0x676   : > { %2924 = vmatprep.subr.bf16.mxu0 %v3150_v52 }
 0x679   : > { %2926 = vmatpush3.bf16.msra.mxu0 %v2925_v36 }
 0x67a   : > { %2927 = vmatprep.subr.bf16.mxu0 %v3150_v52 }
 0x67d   : > { %2929 = vmatpush3.bf16.msra.mxu0 %v2928_v40 }
 0x67e   : > { %2930 = vmatprep.subr.bf16.mxu0 %v3150_v52 }
 0x681   : > { %2932 = vmatpush3.bf16.msra.mxu0 %v2931_v46 }
 0x682   : > { %2830 = vmatprep.subr.mxu0 %v3143_v29 }
 0x747   : > { %v1197_v7 = vpop.f32.mrb[6].mxu0 }
 0x748   : > { %v1198_v8 = vadd.f32 %v1197_v7, %v1126_v30  ;;  %v2778_v9 = vpop.f32.mrb[7].mxu0  ;;  %v3508_v30 = vld [vmem:[%s3738_s2 + $0x28] sm:$0xff]  ;;  %v3513_v7 = vld [vmem:[%s3738_s2 + $0x30] sm:$0xff] }
 0x749   : > { %v2937_v9 = vpack.c.bf16 %v3520_v5, %v3513_v7 }
 0x74a   : > { %v3423_v10 = vadd.f32 %v1198_v8, %v3253_v0  ;;  %v297_v0 = vld [vmem:[%s3739_s3] sm:$0xff]  ;;  %v2933_v8 = vpack.c.bf16 %v3508_v30, %v3503_v2 }
 0x74b   : > { %v2916_v23 = vpack.c.bf16 %v298_v22, %v297_v0  ;;  %v3536_v22 = vrot.slane %v3493_v63, %v337_v28 }
 0x74c   : > { %v1202_v11 = vsel %vm310_vm0, %v3423_v10, 0.0 }
 0x74d   : > { %1203 = vadd.xlane.f32.xlu0 %v1202_v11  ;;  %2917 = vmatpush3.bf16.msra.mxu1 %v2916_v23 }
 0x74e   : > { %2918 = vmatprep.subr.bf16.mxu1 %v3150_v52 }
 0x763   : > { %1215 = vrot.lane.b32.xlu0 %v3268_v6, %s3148_s22 }
 0x767   : > { %1302 = vrot.lane.b32.xlu0 %v1226_v35, %s3148_s22 }
 0x7da   : > { %v1204_v15 = vpop.xlane.xlu0 %1203 }
 0x7db   : > { %v1205_v18 = vmul.f32 0.03125, %v1204_v15 }
 0x7dd   : > { %v1206_v19 = vsub.f32 %v3423_v10, %v1205_v18 }
 0x7de   : > { %v1216_v17 = vpop.permute.xlu0 %1215 }
 0x7df   : > { %v1207_v20 = vmul.f32 %v1206_v19, %v1206_v19 }
 0x7e1   : > { %v1208_v21 = vsel %vm310_vm0, %v1207_v20, 0.0 }
 0x7e2   : > { %1209 = vadd.xlane.f32.xlu1 %v1208_v21  ;;  %v1303_v51 = vpop.permute.xlu0 %1302 }
 0x7f3   : > { %1219 = vrot.lane.b32.xlu1 %v3268_v6, %s3747_s23  ;;  %v300_v6 = vld [vmem:[%s3739_s3 + $0x18] sm:$0xff]  ;;  %s2576_s23 = sshll.u32 %s280_s13, 3 }
 0x7f4   : > { %v2919_v25 = vpack.c.bf16 %v300_v6, %v299_v24  ;;  %s282_s16 = scalar_lea.vmem [#allocation2], %s2576_s23 }
 0x7f5   : > { %s2501_s17 = sshll.u32 %s282_s16, 4  ;;  %s3695_s17 = int_to_ptr.vmem [resolvable:$true] %s2501_s17 }
 0x7f6   : > { %2920 = vmatpush3.bf16.msra.mxu1 %v2919_v25 }
 0x7f7   : > { %2934 = vmatprep.subr.bf16.mxu1 %v2933_v8 }
 0x86f   : > { %v1210_v4 = vpop.xlane.xlu1 %1209 }
 0x870   : > { %v1211_v41 = vmul.f32 0.03125, %v1210_v4 }
 0x872   : > { %v1212_v42 = vadd.f32 1e-05, %v1211_v41 }
 0x873   : > { %v1220_v13 = vpop.permute.xlu1 %1219 }
 0x874   : > { %3054 = vrsqrt.f32 %v1212_v42 }
 0x87e   : > { %v3055_v16 = vpop.eup %3054 }
 0x87f   : > { %v1214_v12 = vmul.f32 %v3055_v16, %v1206_v19 }
 0x881   : > { %v1218_v14 = vmul.f32 %v1216_v17, %v1214_v12 }
 0x883   : > { %v1222_v43 = vadd.f32 %v1220_v13, %v1218_v14 }
 0x885   : > { %2788 = vmatmul.mubr.msk.f32.vlgmr.msra.gmra.mrb[12].mxu1 %vm310_vm0, %v1222_v43 }
 0x886   : > { %2936 = vmatpush3.bf16.msra.mxu1 %v2933_v8 }
 0x887   : > { %2938 = vmatprep.subr.bf16.mxu1 %v2937_v9 }
 0x88a   : > { %2940 = vmatpush3.bf16.msra.mxu1 %v2937_v9 }
 0x88b   : > { %2820 = vmatprep.subr.mxu1 %v3143_v29 }
 0x958   : > { %v1296_v47 = vpop.f32.mrb[12].mxu1 }
 0x959   : > { %v1297_v48 = vadd.f32 %v1296_v47, %v1226_v35  ;;  %v2789_v49 = vpop.f32.mrb[13].mxu1 }
 0x95b   : > { %v1300_v50 = vmax.f32 %v1297_v48, 0.0 }
 0x95d   : > { %2807 = vmatmul.mubr.msk.f32.vlgmr.msra.gmra.mrb[8].mxu0 %vm1305_vm5, %v1300_v50 }
 0x95e   : > { %2832 = vmatprep.mubr.msk.f32.mxu0 %vm3144_vm1, %v3143_v29 }
 0xa30   : > { %v1375_v53 = vpop.f32.mrb[8].mxu0 }
 0xa31   : > { %v1376_v54 = vadd.f32 %v1375_v53, %v1303_v51  ;;  %v2808_v55 = vpop.f32.mrb[9].mxu0 }
 0xa33   : > { %v3484_v56 = vadd.f32 %v1376_v54, %v3423_v10 }
 0xa35   : > { %v1401_v57 = vsel %vm310_vm0, %v3484_v56, 0.0 }
 0xa36   : > { %1402 = vadd.xlane.f32.xlu1 %v1401_v57 }
 0xac3   : > { %v1403_v58 = vpop.xlane.xlu1 %1402 }
 0xac4   : > { %v1404_v59 = vmul.f32 0.03125, %v1403_v58 }
 0xac6   : > { %v1405_v60 = vsub.f32 %v3484_v56, %v1404_v59 }
 0xac8   : > { %v1406_v61 = vmul.f32 %v1405_v60, %v1405_v60 }
 0xaca   : > { %v1407_v62 = vsel %vm310_vm0, %v1406_v61, 0.0 }
 0xacb   : > { %1408 = vadd.xlane.f32.xlu0 %v1407_v62 }
 0xae1   : > { %1420 = vrot.lane.b32.xlu0 %v3498_v1, %s3142_s20 }
 0xb58   : > { %v1409_v10 = vpop.xlane.xlu0 %1408 }
 0xb59   : > { %v1410_v11 = vmul.f32 0.03125, %v1409_v10 }
 0xb5b   : > { %v1411_v15 = vadd.f32 1e-05, %v1410_v11 }
 0xb5c   : > { %v1421_v20 = vpop.permute.xlu0 %1420 }
 0xb5d   : > { %3056 = vrsqrt.f32 %v1411_v15 }
 0xb67   : > { %v3057_v18 = vpop.eup %3056 }
 0xb68   : > { %v1413_v19 = vmul.f32 %v3057_v18, %v1405_v60 }
 0xb6a   : > { %v1418_v21 = vmul.f32 %v3498_v1, %v1413_v19 }
 0xb6c   : > { %v1423_v0 = vadd.f32 %v1421_v20, %v1418_v21 }
 0xb6e   : > { %2817 = vmatprep.mubr.msk.f32.mxu1 %vm310_vm0, %v1423_v0 }
 0xb6f   : > { %2818 = vmatmul.mubr.msk.f32.vlgmr.msra.gmra.mrb[14].mxu1 %vm310_vm0, %v3306_v27 }
 0xb70   : > { %2822 = vmatprep.mubr.msk.f32.mxu1 %vm3144_vm1, %v3143_v29 }
 0xc42   : > { %v2819_v23 = vpop.f32.mrb[14].mxu1 }
 0xc43   : > { %v1503_v24 = vadd.f32 %v2819_v23, %v3536_v22  ;;  %v1497_v6 = vpop.f32.mrb[15].mxu1 }
 0xc44   : > { %v1498_v27 = vadd.f32 %v1497_v6, %v3536_v22  ;;  %v3026_v6 = vpack.i.bf16 %v3508_v30, %v3503_v2 }
 0xc45   : > { %1518 = vrot.lane.b32.xlu0 %v1503_v24, %s3147_s21  ;;  %1514 = vrot.lane.b32.xlu1 %v1503_v24, %s3146_s14 }
 0xc49   : > { %1516 = vrot.lane.b32.xlu1 %v1503_v24, %s3753_s9 }
 0xc4d   : > { %1520 = vrot.lane.b32.xlu1 %v1503_v24, %s3142_s20 }
 0xc51   : > { %1507 = vrot.lane.b32.xlu1 %v1498_v27, %s3146_s14  ;;  %s3754_s14 = smov 32  }
 0xcb7   : > { %v3545_v25 = vpop.permute.xlu0 %1518  ;;  %v3547_v28 = vpop.permute.xlu1 %1514 }
 0xcb8   : > { %1596 = vrot.lane.b32.xlu0 %v3547_v28, %s3142_s20  ;;  %1748 = vrot.lane.b32.xlu1 %v3545_v25, %s3142_s20 }
 0xcbb   : > { %v3553_v26 = vpop.permute.xlu1 %1516 }
 0xcbc   : > { %1672 = vrot.lane.b32.xlu0 %v3553_v26, %s3142_s20  ;;  %1511 = vrot.lane.b32.xlu1 %v1498_v27, %s3147_s21  ;;  %s3755_s21 = smov 8  }
 0xcbf   : > { %v1521_v31 = vpop.permute.xlu1 %1520 }
 0xcc0   : > { %2821 = vmatpush3.xpose.msk.msra.mxu1 %vm436_vm2, %v1521_v31  ;;  %1509 = vrot.lane.b32.xlu0 %v1498_v27, %s3753_s9 }
 0xcc1   : > { %2825 = vmatprep.subr.mxu1 %v3143_v29 }
 0xcc3   : > { %2823 = vmatmul.mubr.msk.f32.vlgmr.msra.gmra.mrb[16].mxu1 %vm436_vm2, %v1498_v27  ;;  %v1508_v32 = vpop.permute.xlu1 %1507 }
 0xcc4   : > { %2827 = vmatprep.mubr.msk.f32.mxu1 %vm3144_vm1, %v3143_v29 }
 0xd2a   : > { %v1597_v34 = vpop.permute.xlu0 %1596  ;;  %v1749_v38 = vpop.permute.xlu1 %1748 }
 0xd2b   : > { %2826 = vmatpush3.xpose.msk.msra.mxu1 %vm436_vm2, %v1597_v34 }
 0xd2c   : > { %2835 = vmatprep.subr.mxu1 %v3143_v29 }
 0xd2e   : > { %v1673_v35 = vpop.permute.xlu0 %1672  ;;  %2828 = vmatmul.mubr.msk.f32.vlgmr.msra.gmra.mrb[18].mxu1 %vm436_vm2, %v1508_v32  ;;  %v1512_v36 = vpop.permute.xlu1 %1511 }
 0xd2f   : > { %2831 = vmatpush3.xpose.msk.msra.mxu0 %vm436_vm2, %v1673_v35  ;;  %2836 = vmatpush3.xpose.msk.msra.mxu1 %vm436_vm2, %v1749_v38 }
 0xd30   : > { %2837 = vmatprep.mubr.msk.f32.mxu1 %vm3144_vm1, %v3143_v29  ;;  %2840 = vmatprep.subr.mxu0 %v3143_v29 }
 0xd31   : > { %2845 = vmatprep.subr.mxu1 %v3143_v29 }
 0xd32   : > { %v1510_v37 = vpop.permute.xlu0 %1509  ;;  %2838 = vmatmul.mubr.msk.f32.vlgmr.msra.gmra.mrb[20].mxu1 %vm436_vm2, %v1512_v36 }
 0xd33   : > { %2833 = vmatmul.mubr.msk.f32.vlgmr.msra.gmra.mrb[10].mxu0 %vm436_vm2, %v1510_v37  ;;  %2847 = vmatprep.mubr.msk.f32.mxu1 %vm3144_vm1, %v3143_v29  ;;  %v3031_v37 = vpack.i.bf16 %v3520_v5, %v3513_v7 }
 0xd34   : > { %2842 = vmatprep.mubr.msk.f32.mxu0 %vm3144_vm1, %v3143_v29 }
 0xd96   : > { %v1592_v39 = vpop.f32.mrb[16].mxu1 }
 0xd97   : > { %v1824_v40 = vmul.f32 0.35355338, %v1592_v39  ;;  %v2824_v4 = vpop.f32.mrb[17].mxu1 }
 0xd99   : > { %v1828_v41 = vsel %vm436_vm2, %v1824_v40, -inf }
 0xd9a   : > { %1829 = vmax.xlane.f32.xlu0 %v1828_v41 }
 0xe01   : > { %v1668_v42 = vpop.f32.mrb[18].mxu1 }
 0xe02   : > { %v1825_v16 = vmul.f32 0.35355338, %v1668_v42  ;;  %v2829_v17 = vpop.f32.mrb[19].mxu1 }
 0xe04   : > { %v1831_v12 = vsel %vm436_vm2, %v1825_v16, -inf }
 0xe05   : > { %1832 = vmax.xlane.f32.xlu1 %v1831_v12  ;;  %v1820_v13 = vpop.f32.mrb[20].mxu1 }
 0xe06   : > { %v1744_v14 = vpop.f32.mrb[10].mxu0  ;;  %v2839_v43 = vpop.f32.mrb[21].mxu1  ;;  %v1827_v46 = vmul.f32 0.35355338, %v1820_v13 }
 0xe07   : > { %v1826_v44 = vmul.f32 0.35355338, %v1744_v14  ;;  %v2834_v45 = vpop.f32.mrb[11].mxu0 }
 0xe08   : > { %v1837_v48 = vsel %vm436_vm2, %v1827_v46, -inf }
 0xe09   : > { %v1834_v47 = vsel %vm436_vm2, %v1826_v44, -inf }
 0xe0a   : > { %1835 = vmax.xlane.f32.xlu0 %v1834_v47 }
 0xe0e   : > { %1838 = vmax.xlane.f32.xlu0 %v1837_v48 }
 0xe16   : > { %1872 = vrot.lane.b32.xlu1 %v1503_v24, %s3148_s22 }
 0xe27   : > { %v1830_v49 = vpop.xlane.xlu0 %1829 }
 0xe28   : > { %v1840_v50 = vsub.f32 %v1824_v40, %v1830_v49 }
 0xe2a   : > { %v1844_v51 = vmul.f32 1.442695, %v1840_v50 }
 0xe2c   : > { %3058 = vpow2.f32 %v1844_v51 }
 0xe36   : > { %v3059_v53 = vpop.eup %3058 }
 0xe37   : > { %v1852_v54 = vsel %vm436_vm2, %v3059_v53, 0.0 }
 0xe3a   : > { %1853 = vadd.xlane.f32.xlu1 %v1852_v54 }
 0xe92   : > { %v1833_v55 = vpop.xlane.xlu1 %1832 }
 0xe93   : > { %v1841_v57 = vsub.f32 %v1825_v16, %v1833_v55 }
 0xe95   : > { %v1846_v58 = vmul.f32 1.442695, %v1841_v57 }
 0xe96   : > { %v1873_v59 = vpop.permute.xlu1 %1872 }
 0xe97   : > { %3060 = vpow2.f32 %v1846_v58  ;;  %v1836_v60 = vpop.xlane.xlu0 %1835  ;;  %2841 = vmatpush3.msra.mxu0 %v1873_v59 }
 0xe98   : > { %v1842_v61 = vsub.f32 %v1826_v44, %v1836_v60  ;;  %2850 = vmatprep.subr.mxu0 %v3143_v29 }
 0xe9a   : > { %v1848_v62 = vmul.f32 1.442695, %v1842_v61 }
 0xe9b   : > { %v1839_v8 = vpop.xlane.xlu0 %1838 }
 0xe9c   : > { %3062 = vpow2.f32 %v1848_v62  ;;  %v1843_v9 = vsub.f32 %v1827_v46, %v1839_v8 }
 0xe9e   : > { %v1850_v10 = vmul.f32 1.442695, %v1843_v9 }
 0xea0   : > { %3064 = vpow2.f32 %v1850_v10 }
 0xea1   : > { %v3061_v11 = vpop.eup %3060 }
 0xea2   : > { %v1855_v15 = vsel %vm436_vm2, %v3061_v11, 0.0 }
 0xea3   : > { %1856 = vadd.xlane.f32.xlu0 %v1855_v15 }
 0xea6   : > { %v3063_v18 = vpop.eup %3062 }
 0xea7   : > { %v1858_v19 = vsel %vm436_vm2, %v3063_v18, 0.0 }
 0xea8   : > { %1859 = vadd.xlane.f32.xlu1 %v1858_v19  ;;  %v2605_v19 = vld [vmem:[%s3740_s4 + $0x48] sm:$0xff] }
 0xeaa   : > { %v3065_v20 = vpop.eup %3064 }
 0xeab   : > { %v1861_v21 = vsel %vm436_vm2, %v3065_v20, 0.0 }
 0xeac   : > { %1862 = vadd.xlane.f32.xlu0 %v1861_v21  ;;  %v2309_v21 = vrot.slane %v3493_v63, %v1225_v33 }
 0xeb9   : > { %2024 = vrot.lane.b32.xlu1 %v3553_v26, %s3148_s22 }
 0xebd   : > { %2100 = vrot.lane.b32.xlu1 %v3545_v25, %s3148_s22 }
 0xec1   : > { %3032 = vrot.lane.b32.xlu1 %v3031_v37, %s3754_s14 }
 0xec2   : > { %1948 = vrot.lane.b32.xlu0 %v3547_v28, %s3148_s22 }
 0xec6   : > { %3027 = vrot.lane.b32.xlu0 %v3026_v6, %s3754_s14  ;;  %v2608_v6 = vld [vmem:[%s3740_s4 + $0x60] sm:$0xff] }
 0xec7   : > { %v1854_v0 = vpop.xlane.xlu1 %1853  ;;  %v2960_v33 = vpack.c.bf16 %v2609_v3, %v2608_v6 }
 0xec8   : > { %3066 = vrcp.f32 %v1854_v0 }
 0xed2   : > { %v3067_v23 = vpop.eup %3066 }
 0xed3   : > { %v1868_v24 = vmul.f32 %v3067_v23, %v3059_v53  ;;  %v2607_v23 = vld [vmem:[%s3740_s4 + $0x58] sm:$0xff] }
 0xed5   : > { %2843 = vmatmul.mubr.msk.f32.vlgmr.msra.gmra.mrb[12].mxu0 %vm436_vm2, %v1868_v24 }
 0xed6   : > { %2852 = vmatprep.mubr.msk.f32.mxu0 %vm3144_vm1, %v3143_v29 }
 0xf30   : > { %v1857_v27 = vpop.xlane.xlu0 %1856 }
 0xf31   : > { %3068 = vrcp.f32 %v1857_v27 }
 0xf35   : > { %v1860_v25 = vpop.xlane.xlu1 %1859 }
 0xf36   : > { %3070 = vrcp.f32 %v1860_v25 }
 0xf39   : > { %v2025_v26 = vpop.permute.xlu1 %2024  ;;  %v1863_v28 = vpop.xlane.xlu0 %1862 }
 0xf3a   : > { %3072 = vrcp.f32 %v1863_v28  ;;  %2851 = vmatpush3.msra.mxu0 %v2025_v26 }
 0xf3b   : > { %v3069_v31 = vpop.eup %3068  ;;  %2941 = vmatprep.subr.bf16.mxu0 %v3150_v52 }
 0xf3c   : > { %v1869_v32 = vmul.f32 %v3069_v31, %v3061_v11  ;;  %v2602_v11 = vld [vmem:[%s3739_s3 + $0x30] sm:$0xff] }
 0xf3d   : > { %v1949_v34 = vpop.permute.xlu0 %1948  ;;  %v2101_v38 = vpop.permute.xlu1 %2100 }
 0xf3e   : > { %2846 = vmatpush3.msra.mxu1 %v1949_v34 }
 0xf3f   : > { %2848 = vmatmul.mubr.msk.f32.vlgmr.msra.gmra.mrb[22].mxu1 %vm436_vm2, %v1869_v32  ;;  %2855 = vmatprep.subr.mxu1 %v3143_v29 }
 0xf40   : > { %v3071_v2 = vpop.eup %3070  ;;  %2856 = vmatpush3.msra.mxu1 %v2101_v38  ;;  %2857 = vmatprep.mubr.msk.f32.mxu1 %vm3144_vm1, %v3143_v29 }
 0xf41   : > { %v1870_v30 = vmul.f32 %v3071_v2, %v3063_v18  ;;  %2947 = vmatprep.subr.bf16.mxu1 %v3150_v52  ;;  %v3028_v39 = vpop.permute.xlu0 %3027  ;;  %v3033_v17 = vpop.permute.xlu1 %3032  ;;  %v2604_v18 = vld [vmem:[%s3740_s4 + $0x40] sm:$0xff]  ;;  %v2610_v2 = vld [vmem:[%s3740_s4 + $0x70] sm:$0xff] }
 0xf42   : > { %v3030_v40 = vunpack.i.h.bf16 %v3028_v39  ;;  %v3029_v4 = vunpack.i.l.bf16 %v3028_v39  ;;  %v3035_v12 = vunpack.i.h.bf16 %v3033_v17  ;;  %v3034_v13 = vunpack.i.l.bf16 %v3033_v17 }
 0xf43   : > { %2853 = vmatmul.mubr.msk.f32.vlgmr.msra.gmra.mrb[14].mxu0 %vm436_vm2, %v1870_v30  ;;  %v2954_v0 = vpack.c.bf16 %v2605_v19, %v2604_v18 }
 0xf44   : > { %v3073_v35 = vpop.eup %3072  ;;  %2868 = vmatprep.mubr.msk.f32.mxu0 %vm3144_vm1, %v3143_v29  ;;  %v2942_v41 = vpack.c.bf16 %v3030_v40, %v3029_v4  ;;  %v2945_v14 = vpack.c.bf16 %v3035_v12, %v3034_v13 }
 0xf45   : > { %v1871_v36 = vmul.f32 %v3073_v35, %v3065_v20  ;;  %v2606_v20 = vld [vmem:[%s3740_s4 + $0x50] sm:$0xff] }
 0xf46   : > { %2943 = vmatpush3.bf16.msra.mxu0 %v2942_v41  ;;  %v2957_v24 = vpack.c.bf16 %v2607_v23, %v2606_v20 }
 0xf47   : > { %2858 = vmatmul.mubr.msk.f32.vlgmr.msra.gmra.mrb[24].mxu1 %vm436_vm2, %v1871_v36  ;;  %2944 = vmatprep.subr.bf16.mxu0 %v3150_v52 }
 0xf48   : > { %2879 = vmatprep.mubr.msk.f32.mxu1 %vm3144_vm1, %v3143_v29 }
 0xf4a   : > { %2946 = vmatpush3.bf16.msra.mxu0 %v2945_v14 }
 0xf4b   : > { %2953 = vmatprep.subr.bf16.mxu0 %v3150_v52 }
 0xfa8   : > { %v1944_v42 = vpop.f32.mrb[12].mxu0 }
 0xfa9   : > { %v2844_v16 = vpop.f32.mrb[13].mxu0 }
0x1012   : > { %v2020_v43 = vpop.f32.mrb[22].mxu1 }
0x1013   : > { %2177 = vrot.lane.b32.xlu0 %v2020_v43, %s3755_s21  ;;  %v2849_v7 = vpop.f32.mrb[23].mxu1  ;;  %s3082_s21 = sshll.u32 %s3154_s28, 4  ;;  %s3083_s21 = int_to_ptr.vmem [resolvable:$false] %s3082_s21 }
0x1014   : > { %p3085_p0 = scmp.lt.s32.totalorder %s3695_s17, %s3083_s21 }
0x1016   : > { %v2096_v5 = vpop.f32.mrb[14].mxu0 }
0x1017   : > { %2181 = vrot.lane.b32.xlu1 %v2096_v5, %s3756_s29  ;;  %v2854_v44 = vpop.f32.mrb[15].mxu0  ;;  %v2630_v5 = vld [vmem:[%s3742_s6] ss:$0 sm:$0xff]  ;;  %s3084_s29 = scalar_lea.vmem %s3083_s21, 256 }
0x101a   : > { %v2172_v45 = vpop.f32.mrb[24].mxu1 }
0x101b   : > { %2185 = vrot.lane.b32.xlu0 %v2172_v45, %s3757_s8  ;;  %v2859_v46 = vpop.f32.mrb[25].mxu1  ;;  %2208 = vrot.lane.b32.xlu1 %v3536_v22, %s3754_s14 }
0x1085   : > { %v2178_v47 = vpop.permute.xlu0 %2177 }
0x1086   : > { %v2188_v49 = vsel %vm436_vm2, %v1944_v42, %v2178_v47 }
0x1089   : > { %v2182_v48 = vpop.permute.xlu1 %2181 }
0x108a   : > { %v2189_v50 = vsel %vm1104_vm3, %v2188_v49, %v2182_v48 }
0x108d   : > { %v2186_v51 = vpop.permute.xlu0 %2185  ;;  %v2209_v54 = vpop.permute.xlu1 %2208 }
0x108e   : > { %v2190_v53 = vsel %vm1106_vm4, %v2189_v50, %v2186_v51 }
0x108f   : > { %2869 = vmatmul.mubr.msk.f32.vlgmr.msra.gmra.mrb[16].mxu0 %vm310_vm0, %v2190_v53 }
0x1090   : > { %2898 = vmatprep.mubr.msk.f32.mxu0 %vm3144_vm1, %v3143_v29  ;;  %v2600_v29 = vld [vmem:[%s3739_s3 + $0x20] sm:$0xff]  ;;  %2955 = vmatpush3.bf16.msra.mxu0 %v2954_v0 }
0x1091   : > { %2956 = vmatprep.subr.bf16.mxu0 %v3150_v52 }
0x1094   : > { %2958 = vmatpush3.bf16.msra.mxu0 %v2957_v24 }
0x1095   : > { %2959 = vmatprep.subr.bf16.mxu0 %v3150_v52 }
0x1098   : > { %2961 = vmatpush3.bf16.msra.mxu0 %v2960_v33 }
0x1099   : > { %2962 = vmatprep.subr.bf16.mxu0 %v3150_v52 }
0x1162   : > { %v2280_v55 = vpop.f32.mrb[16].mxu0 }
0x1163   : > { %v2281_v57 = vadd.f32 %v2280_v55, %v2209_v54  ;;  %v2870_v58 = vpop.f32.mrb[17].mxu0 }
0x1165   : > { %v2284_v22 = vadd.f32 %v2281_v57, %v3484_v56  ;;  %v2601_v56 = vld [vmem:[%s3739_s3 + $0x28] sm:$0xff] }
0x1166   : > { %v2948_v10 = vpack.c.bf16 %v2601_v56, %v2600_v29 }
0x1167   : > { %v2285_v59 = vsel %vm310_vm0, %v2284_v22, 0.0 }
0x1168   : > { %2286 = vadd.xlane.f32.xlu0 %v2285_v59  ;;  %2949 = vmatpush3.bf16.msra.mxu1 %v2948_v10 }
0x1169   : > { %2950 = vmatprep.subr.bf16.mxu1 %v3150_v52  ;;  %v2611_v52 = vld [vmem:[%s3740_s4 + $0x78] sm:$0xff] }
0x116a   : > { %v2963_v30 = vpack.c.bf16 %v2611_v52, %v2610_v2 }
0x116c   : > { %2964 = vmatpush3.bf16.msra.mxu0 %v2963_v30 }
0x117e   : > { %2298 = vrot.lane.b32.xlu0 %v3498_v1, %s3148_s22 }
0x1182   : > { %2385 = vrot.lane.b32.xlu0 %v2309_v21, %s3148_s22  ;;  %s3693_s22 = scalar_lea.hbm %s3743_s7, %s2632_s15 }
0x11f5   : > { %v2287_v60 = vpop.xlane.xlu0 %2286 }
0x11f6   : > { %v2288_v61 = vmul.f32 0.03125, %v2287_v60 }
0x11f8   : > { %v2289_v62 = vsub.f32 %v2284_v22, %v2288_v61 }
0x11f9   : > { %v2299_v28 = vpop.permute.xlu0 %2298 }
0x11fa   : > { %v2290_v8 = vmul.f32 %v2289_v62, %v2289_v62 }
0x11fc   : > { %v2291_v9 = vsel %vm310_vm0, %v2290_v8, 0.0 }
0x11fd   : > { %2292 = vadd.xlane.f32.xlu1 %v2291_v9  ;;  %v2386_v40 = vpop.permute.xlu0 %2385 }
0x120e   : > { %2302 = vrot.lane.b32.xlu1 %v3498_v1, %s3754_s14  ;;  %v2603_v1 = vld [vmem:[%s3739_s3 + $0x38] sm:$0xff]  ;;  %s3078_s14 = scalar_lea.vmem %s3695_s17, 128 }
0x120f   : > { %v2951_v15 = vpack.c.bf16 %v2603_v1, %v2602_v11  ;;  %p3079_p11 = scmp.ne.s32.totalorder %s3695_s17, %s3078_s14  ;;  %p3086_p1 = scmp.lt.s32.totalorder %s3084_s29, %s3078_s14 }
0x1211   : > { %2952 = vmatpush3.bf16.msra.mxu1 %v2951_v15  ;;  %p3080_p12 = pnand %p3079_p11, %p3233_p5  ;;  %p3087_p2 = por %p3086_p1, %p3085_p0 }
0x1213   : > { %p3081_p13 = pneg %p3080_p12 }
0x1215   : > { %p3088_p3 = pnand %p3087_p2, %p3081_p13 }
0x128a   : > { %v2293_v63 = vpop.xlane.xlu1 %2292 }
0x128b   : > { %v2294_v27 = vmul.f32 0.03125, %v2293_v63 }
0x128d   : > { %v2295_v25 = vadd.f32 1e-05, %v2294_v27 }
0x128e   : > { %v2303_v32 = vpop.permute.xlu1 %2302 }
0x128f   : > { %3074 = vrsqrt.f32 %v2295_v25 }
0x1299   : > { %v3075_v26 = vpop.eup %3074 }
0x129a   : > { %v2297_v31 = vmul.f32 %v3075_v26, %v2289_v62 }
0x129c   : > { %v2301_v34 = vmul.f32 %v2299_v28, %v2297_v31 }
0x129e   : > { %v2305_v38 = vadd.f32 %v2303_v32, %v2301_v34 }
0x12a0   : > { %2880 = vmatmul.mubr.msk.f32.vlgmr.msra.gmra.mrb[26].mxu1 %vm310_vm0, %v2305_v38 }
0x1373   : > { %v2379_v35 = vpop.f32.mrb[26].mxu1 }
0x1374   : > { %v2380_v36 = vadd.f32 %v2379_v35, %v2309_v21  ;;  %v2881_v37 = vpop.f32.mrb[27].mxu1 }
0x1376   : > { %v2383_v39 = vmax.f32 %v2380_v36, 0.0 }
0x1378   : > { %2899 = vmatmul.mubr.msk.f32.vlgmr.msra.gmra.mrb[18].mxu0 %vm1305_vm5, %v2383_v39 }
0x144b   : > { %v2457_v4 = vpop.f32.mrb[18].mxu0 }
0x144c   : > { %v2458_v41 = vadd.f32 %v2457_v4, %v2386_v40  ;;  %v2900_v42 = vpop.f32.mrb[19].mxu0 }
0x144e   : > { %v2461_v16 = vadd.f32 %v2458_v41, %v2284_v22 }
0x1450   : > { %v2463_v17 = vsel %vm310_vm0, %v2461_v16, 0.0 }
0x1451   : > { %2464 = vadd.xlane.f32.xlu1 %v2463_v17 }
0x14de   : > { %v2465_v12 = vpop.xlane.xlu1 %2464 }
0x14df   : > { %v2466_v13 = vmul.f32 0.03125, %v2465_v12 }
0x14e1   : > { %v2467_v14 = vsub.f32 %v2461_v16, %v2466_v13 }
0x14e3   : > { %v2468_v43 = vmul.f32 %v2467_v14, %v2467_v14 }
0x14e5   : > { %v2469_v7 = vsel %vm310_vm0, %v2468_v43, 0.0 }
0x14e6   : > { %2470 = vadd.xlane.f32.xlu0 %v2469_v7 }
0x14fc   : > { %2482 = vrot.lane.b32.xlu0 %v2630_v5, %s3142_s20  ;;  %s2488_s20 = scalar_lea.sflag [#allocation3], %s280_s13 }
0x1573   : > { %v2471_v44 = vpop.xlane.xlu0 %2470 }
0x1574   : > { %v2472_v45 = vmul.f32 0.03125, %v2471_v44 }
0x1576   : > { %v2473_v46 = vadd.f32 1e-05, %v2472_v45 }
0x1577   : > { %v2483_v49 = vpop.permute.xlu0 %2482 }
0x1578   : > { %3076 = vrsqrt.f32 %v2473_v46 }
0x1582   : > { %v3077_v47 = vpop.eup %3076 }
0x1583   : > { %v2475_v48 = vmul.f32 %v3077_v47, %v2467_v14 }
0x1585   : > { %v2480_v50 = vmul.f32 %v2630_v5, %v2475_v48 }
0x1587   : > { %v2485_v51 = vadd.f32 %v2483_v49, %v2480_v50 }
0x1589   : > { %2486 = vst.msk [vmem:[%s282_s16] sm:$0xff] %vm310_vm0, %v2485_v51 }
0x158a   : > { %3091 = shalt.err (!%p3088_p3)
}
0x158b   : > { %s3092_s8 = scalar_lea.hbm %s3693_s22, 128  ;;  %s3096_s23 = scalar_lea.hbm %s3743_s7, 256 }
0x158c   : > { %p3093_p4 = scmp.ne.s32.totalorder %s3693_s22, %s3092_s8  ;;  %p3097_p9 = scmp.lt.u32.totalorder %s3693_s22, %s3743_s7 }
0x158d   : > { %p3098_p10 = scmp.lt.u32.totalorder %s3096_s23, %s3092_s8  ;;  %p3100_p12 = scmp.lt.u32.totalorder %s3092_s8, %s3693_s22 }
0x158e   : > { %p3094_p7 = pnand %p3093_p4, %p3233_p5 }
0x158f   : > { %p3099_p11 = por %p3098_p10, %p3097_p9 }
0x1590   : > { %p3095_p8 = pneg %p3094_p7 }
0x1591   : > { %p3101_p13 = por %p3100_p12, %p3099_p11 }
0x1593   : > { %p3102_p0 = pnand %p3101_p13, %p3095_p8 }
0x1595   : > { %3105 = shalt.err (!%p3102_p0)
}
0x1596   : > { %2965 = dma.vmem_to_hbm [thread:$0]  (%p3233_p5), %s3695_s17, 128, %s3693_s22, %s2488_s20  }
0x1597 PF: > { %p2971_p1 = scmp.ge.s32.totalorder %s3140_s27, 2  ;;  %s2513_s18 = sand.u32 1, %s3128_s24  }
0x1598   : > { %s2514_s9 = scalar_lea.sflag [#allocation3], %s2513_s18 }
0x1599   : > { %p2968_p2 = pnand %p2971_p1, %p3237_p6 }
0x159b   : > { %3123 = dma.done.wait (!%p2968_p2), %s2514_s9, 128  }
0x159c   : > { %3125 = vsyncadd (!%p2968_p2), %s2514_s9, 4294967168  ;;  %p17_p3 = scmp.ge.s32.totalorder %s3220_s30, 4   ;;  %s3758_s24 = smov %s3132_s25 }
0x159d   : > { %s3759_s25 = smov %s3136_s26  ;;  %s3760_s26 = smov %s3231_s10 }
0x159e   : > { %s3761_s27 = smov %s3220_s30  ;;  %19 = sbr.rel (!%p17_p3) target bundleno = 3 (0x3), region = 90 }
0x15a5   :  { %2519 = vsyncpa [#allocation3], 1 }
0x15a6   :  { %2521 = vsyncpa [#allocation3 + $0x1], 1 }

</bundles_post_ra>
